<compile_context>
chip_gen: v6e
topology: v6e:2x2x1
jax: 0.10.0
libtpu: 0.0.40
codegen_flags: <defaults>
</compile_context>

<pallas_src>
import functools

import jax
import jax.numpy as jnp
from jax.experimental import pallas as pl
from jax.experimental.pallas import tpu as pltpu

T_EPSILON = 1e-07
_NEG_INF = -1e30
_VMEM_BUDGET_BYTES = 20 * 1024 * 1024   # target per-grid-step footprint
_VMEM_LIMIT_BYTES = 32 * 1024 * 1024    # <= physical headroom on v5e/v6e/v7x


def _caps_kernel(x_ref, w_ref, expand_ref, contract_ref, bmask_ref, out_ref, *,
                 routings, block_b, seq_len):
    """One batch block per grid step.

    x_ref:        (1, block_b*T, Din)     input rows for this batch block (f32)
    w_ref:        (Din, NCDC_pad)         shared projection weights (bf16)
    expand_ref:   (NCP, NCDC_pad)         0/1 capsule->lane expander (f32)
    contract_ref: (NCDC_pad, NCP)         0/1 lane->capsule reducer  (f32)
    bmask_ref:    (1, NCP)                0 for real capsules, -1e30 for padded
    out_ref:      (1, block_b, NCDC_pad)  routed + squashed output capsules
    """
    f32 = jnp.float32
    ncdc = out_ref.shape[-1]
    bt = block_b * seq_len

    # --- fused projection: one lane-dense bf16 MXU matmul, f32 accumulate ---
    x2d = x_ref[0].astype(jnp.bfloat16)                               # (bt, Din)
    u = jnp.dot(x2d, w_ref[...], preferred_element_type=f32)          # (bt, ncdc)
    # u[b*T + t, n*DC + d] == u_hat_vecs[b, n, t, d] of the PyTorch reference.
    u3 = u.reshape(block_b, seq_len, ncdc)     # lane dim preserved -> free reshape

    expand = expand_ref[...]
    contract = contract_ref[...]
    bmask = bmask_ref[...]                                            # (1, ncp)
    ncp = bmask.shape[-1]

    # --- dynamic routing (`b` is REPLACED each iteration, as in the module) ---
    b = jnp.zeros((bt, ncp), f32) + bmask     # padded capsules masked to -1e30
    outputs = jnp.zeros((block_b, ncdc), f32)
    # routings is small (5) and block_b*T is VMEM-budget-bounded: keep the
    # static unroll for LLO scheduling visibility.
    for r in range(routings):
        # softmax over the (padded) output-capsule axis, per (batch, t) row
        m = jnp.max(b, axis=-1, keepdims=True)
        e = jnp.exp(b - m)
        c = e * pl.reciprocal(jnp.sum(e, axis=-1, keepdims=True), approx=True)

        # s[b, n, :] = sum_t c[b, t, n] * u[b, t, n, :]
        c_exp = jnp.dot(c, expand, preferred_element_type=f32)        # (bt, ncdc)
        s = jnp.sum(c_exp.reshape(block_b, seq_len, ncdc) * u3, axis=1)

        # squash: s / sqrt(||s_n||^2 + eps) per output capsule (EUP rsqrt)
        sq = jnp.dot(s * s, contract, preferred_element_type=f32)     # (block_b, ncp)
        scale = jax.lax.rsqrt(sq + T_EPSILON)
        outputs = s * jnp.dot(scale, expand, preferred_element_type=f32)

        if r < routings - 1:
            # b[b, t, n] = sum_d outputs[b, n, d] * u[b, t, n, d]
            prod = outputs[:, None, :] * u3        # sublane broadcast over T
            b = jnp.dot(prod.reshape(bt, ncdc), contract,
                        preferred_element_type=f32) + bmask

    out_ref[0] = outputs.astype(out_ref.dtype)     # unmasked lane-dense store


def _footprint_bytes(block_b, seq_len, din, ncdc_pad, ncp):
    """Rough per-grid-step VMEM footprint estimate (double-buffers included)."""
    bt = block_b * seq_len
    const = din * ncdc_pad * 2                 # W (bf16), constant index_map
    const += 2 * ncp * ncdc_pad * 4            # expand + contract
    per = 2 * bt * din * 4                     # x block (f32), double buffered
    per += 2 * block_b * ncdc_pad * 4          # out block, double buffered
    per += 6 * bt * ncdc_pad * 4               # u, c_exp, prod + headroom
    per += 4 * bt * ncp * 4                    # b / c / softmax temps
    return const + per


def _device_kind():
    try:
        return jax.devices()[0].device_kind.lower()
    except Exception:
        return ""


def _pick_block_b(batch, seq_len, din, ncdc_pad, ncp, *, budget_bytes,
                  want_multi_core):
    """Divisor of `batch` maximizing matmul rows under a VMEM budget.

    On multi-TensorCore chips prefer an even number (>=2) of grid steps so the
    'parallel' axis load-balances across cores; on 1-TC chips the grid is a
    serial loop, so take the fewest / largest steps that fit.
    """
    divisors = [d for d in range(1, batch + 1) if batch % d == 0]
    feasible = [d for d in divisors
                if _footprint_bytes(d, seq_len, din, ncdc_pad, ncp) <= budget_bytes]
    if not feasible:
        feasible = [1]
    if want_multi_core and batch >= 2:
        even = [d for d in feasible if (batch // d) >= 2 and (batch // d) % 2 == 0]
        if even:
            return max(even)
        multi = [d for d in feasible if (batch // d) >= 2]
        if multi:
            return max(multi)
    return max(feasible)


def caps_layer(x, w, *, num_capsule, dim_capsule, routings, block_b=None):
    """Pallas implementation of Caps_Layer.forward (share_weights=True, squash).

    x: (B, T, Din) float32
    w: (1, Din, NC*DC) float32   (same parameter shape as the PyTorch module)
    returns: (B, NC, DC) float32
    """
    B, T, Din = x.shape
    ncdc = num_capsule * dim_capsule

    # Pad the output lane dimension up to a multiple of 128 using whole fake
    # capsules (unmasked vst stores, full-width MXU output tiles).
    ncdc_pad = -(-ncdc // 128) * 128
    ncp = -(-ncdc_pad // dim_capsule)
    ncdc_pad = ncp * dim_capsule

    kind = _device_kind()
    want_multi_core = ("v7" in kind) or ("v4" in kind)
    if block_b is None:
        block_b = _pick_block_b(B, T, Din, ncdc_pad, ncp,
                                budget_bytes=_VMEM_BUDGET_BYTES,
                                want_multi_core=want_multi_core)
    assert B % block_b == 0, "block_b must divide the batch size"
    num_blocks = B // block_b

    # Shared weights: lane-pad with zero columns and cast to bf16 (MXU operand).
    w2 = w.reshape(Din, ncdc)
    w2 = jnp.pad(w2, ((0, 0), (0, ncdc_pad - ncdc))).astype(jnp.bfloat16)

    # Constant capsule selectors + routing-logit mask (built once, passed as
    # VMEM-resident inputs with constant index_maps).
    col_caps = jnp.arange(ncdc_pad, dtype=jnp.int32) // dim_capsule
    expand = (jnp.arange(ncp, dtype=jnp.int32)[:, None]
              == col_caps[None, :]).astype(jnp.float32)            # (ncp, ncdc_pad)
    contract = expand.T                                            # (ncdc_pad, ncp)
    bmask = jnp.where(jnp.arange(ncp) < num_capsule,
                      0.0, _NEG_INF).astype(jnp.float32)[None, :]  # (1, ncp)

    x3 = x.reshape(num_blocks, block_b * T, Din)   # free row-major reshape

    kernel = functools.partial(_caps_kernel, routings=routings,
                               block_b=block_b, seq_len=T)

    out = pl.pallas_call(
        kernel,
        out_shape=jax.ShapeDtypeStruct((num_blocks, block_b, ncdc_pad), x.dtype),
        grid_spec=pltpu.PrefetchScalarGridSpec(
            num_scalar_prefetch=0,
            grid=(num_blocks,),
            in_specs=[
                pl.BlockSpec((1, block_b * T, Din), lambda i: (i, 0, 0)),
                pl.BlockSpec((Din, ncdc_pad), lambda i: (0, 0)),     # W (resident)
                pl.BlockSpec((ncp, ncdc_pad), lambda i: (0, 0)),     # expand
                pl.BlockSpec((ncdc_pad, ncp), lambda i: (0, 0)),     # contract
                pl.BlockSpec((1, ncp), lambda i: (0, 0)),            # b mask
            ],
            out_specs=pl.BlockSpec((1, block_b, ncdc_pad), lambda i: (i, 0, 0)),
        ),
        compiler_params=pltpu.CompilerParams(
            dimension_semantics=("parallel",),
            vmem_limit_bytes=_VMEM_LIMIT_BYTES),
    )(x3, w2, expand, contract, bmask)

    out = out.reshape(B, ncdc_pad)[:, :ncdc]       # drop padded fake capsules
    return out.reshape(B, num_capsule, dim_capsule)


def caps_layer_ref(x, w, *, num_capsule, dim_capsule, routings):
    """Pure-JAX reference mirroring the PyTorch forward exactly (f32)."""
    B, T, _ = x.shape
    u = jnp.matmul(x, w)  # (B, T, NC*DC)
    u = u.reshape(B, T, num_capsule, dim_capsule).transpose(0, 2, 1, 3)  # (B,NC,T,DC)
    b = jnp.zeros(u.shape[:3], u.dtype)  # (B, NC, T)
    outputs = None
    for i in range(routings):
        c = jax.nn.softmax(b, axis=1)                       # softmax over NC
        s = jnp.einsum("bij,bijk->bik", c, u)               # (B, NC, DC)
        outputs = s / jnp.sqrt(jnp.sum(s**2, -1, keepdims=True) + T_EPSILON)
        if i < routings - 1:
            b = jnp.einsum("bik,bijk->bij", outputs, u)
    return outputs


if __name__ == "__main__":
    # Small shapes consistent with the module:
    #   batch=2, input_num_capsule (seq)=8, input_dim_capsule=32,
    #   num_capsule=10, dim_capsule=16, routings=5
    B, T, Din = 2, 8, 32
    NC, DC, ROUT = 10, 16, 5

    key = jax.random.PRNGKey(0)
    kx, kw = jax.random.split(key)
    x = jax.random.normal(kx, (B, T, Din), jnp.float32)

    # Deterministic xavier-normal-style init for W (1, Din, NC*DC)
    fan_in, fan_out = Din * NC * DC, 1 * NC * DC
    std = (2.0 / (fan_in + fan_out)) ** 0.5
    w = std * jax.random.normal(kw, (1, Din, NC * DC), jnp.float32)

    out = caps_layer(x, w, num_capsule=NC, dim_capsule=DC, routings=ROUT)
    out = jax.block_until_ready(out)

    ref = caps_layer_ref(x, w, num_capsule=NC, dim_capsule=DC, routings=ROUT)
    assert out.shape == (B, NC, DC)
    if not bool(jnp.allclose(out, ref, atol=2e-2, rtol=2e-2)):
        max_err = float(jnp.max(jnp.abs(out - ref)))
        raise AssertionError(
            f"Pallas kernel does not match JAX reference (max abs err {max_err})")

    print("KERNEL_OK")
</pallas_src>

<mosaic_0001>
module attributes {stable_mosaic.version = 11 : i64} {
  func.func @_caps_kernel(%arg0: i32, %arg1: memref<1x16x32xf32, #tpu.memory_space<vmem>>, %arg2: memref<32x256xbf16, #tpu.memory_space<vmem>>, %arg3: memref<16x256xf32, #tpu.memory_space<vmem>>, %arg4: memref<256x16xf32, #tpu.memory_space<vmem>>, %arg5: memref<1x16xf32, #tpu.memory_space<vmem>>, %arg6: memref<1x2x256xf32, #tpu.memory_space<vmem>>) attributes {dimension_semantics = [#tpu.dimension_semantics<parallel>], iteration_bounds = array<i64: 1>, scalar_prefetch = 0 : i64, scratch_operands = 0 : i64, tpu.core_type = #tpu.core_type<tc>, window_params = [{transform_indices = @transform_0, window_bounds = array<i64: 1, 16, 32>}, {pipeline_mode = #tpu.pipeline_mode<synchronous>, transform_indices = @transform_1, window_bounds = array<i64: 32, 256>}, {pipeline_mode = #tpu.pipeline_mode<synchronous>, transform_indices = @transform_2, window_bounds = array<i64: 16, 256>}, {pipeline_mode = #tpu.pipeline_mode<synchronous>, transform_indices = @transform_3, window_bounds = array<i64: 256, 16>}, {pipeline_mode = #tpu.pipeline_mode<synchronous>, transform_indices = @transform_4, window_bounds = array<i64: 1, 16>}, {transform_indices = @transform_5, window_bounds = array<i64: 1, 2, 256>}]} {
    %c0 = arith.constant 0 : index
    %c0_0 = arith.constant 0 : index
    %c0_1 = arith.constant 0 : index
    %0 = vector.load %arg1[%c0, %c0_0, %c0_1] : memref<1x16x32xf32, #tpu.memory_space<vmem>>, vector<1x16x32xf32>
    %1 = vector.shape_cast %0 : vector<1x16x32xf32> to vector<16x32xf32>
    %2 = arith.truncf %1 : vector<16x32xf32> to vector<16x32xbf16>
    %c0_2 = arith.constant 0 : index
    %c0_3 = arith.constant 0 : index
    %3 = vector.load %arg2[%c0_2, %c0_3] : memref<32x256xbf16, #tpu.memory_space<vmem>>, vector<32x256xbf16>
    %cst = arith.constant dense<0.000000e+00> : vector<16x256xf32>
    %4 = tpu.matmul %2, %3, %cst {dimension_numbers = #tpu.dot_dimension_numbers<[1], [0], [0], [1], [0, 0, 1, 1], [], []>} : vector<16x32xbf16>, vector<32x256xbf16>, vector<16x256xf32> -> vector<16x256xf32>
    %5 = vector.shape_cast %4 : vector<16x256xf32> to vector<2x8x256xf32>
    %c0_4 = arith.constant 0 : index
    %c0_5 = arith.constant 0 : index
    %6 = vector.load %arg3[%c0_4, %c0_5] : memref<16x256xf32, #tpu.memory_space<vmem>>, vector<16x256xf32>
    %c0_6 = arith.constant 0 : index
    %c0_7 = arith.constant 0 : index
    %7 = vector.load %arg4[%c0_6, %c0_7] : memref<256x16xf32, #tpu.memory_space<vmem>>, vector<256x16xf32>
    %c0_8 = arith.constant 0 : index
    %c0_9 = arith.constant 0 : index
    %8 = vector.load %arg5[%c0_8, %c0_9] : memref<1x16xf32, #tpu.memory_space<vmem>>, vector<1x16xf32>
    %cst_10 = arith.constant 0.000000e+00 : f32
    %9 = vector.broadcast %cst_10 : f32 to vector<16x16xf32>
    %10 = vector.broadcast %8 : vector<1x16xf32> to vector<16x16xf32>
    %11 = arith.addf %9, %10 : vector<16x16xf32>
    %cst_11 = arith.constant dense<0xFF800000> : vector<16xf32>
    %12 = vector.multi_reduction <maximumf>, %11, %cst_11 [1] : vector<16x16xf32> to vector<16xf32>
    %13 = vector.shape_cast %12 : vector<16xf32> to vector<16x1xf32>
    %14 = vector.broadcast %13 : vector<16x1xf32> to vector<16x16xf32>
    %15 = arith.subf %11, %14 : vector<16x16xf32>
    %16 = math.exp %15 : vector<16x16xf32>
    %cst_12 = arith.constant dense<0.000000e+00> : vector<16xf32>
    %17 = vector.multi_reduction <add>, %16, %cst_12 [1] : vector<16x16xf32> to vector<16xf32>
    %18 = vector.shape_cast %17 : vector<16xf32> to vector<16x1xf32>
    %19 = tpu.reciprocal %18 {approx = true} : vector<16x1xf32> -> vector<16x1xf32>
    %20 = vector.broadcast %19 : vector<16x1xf32> to vector<16x16xf32>
    %21 = arith.mulf %16, %20 : vector<16x16xf32>
    %cst_13 = arith.constant dense<0.000000e+00> : vector<16x256xf32>
    %22 = tpu.matmul %21, %6, %cst_13 {dimension_numbers = #tpu.dot_dimension_numbers<[1], [0], [0], [1], [0, 0, 1, 1], [], []>} : vector<16x16xf32>, vector<16x256xf32>, vector<16x256xf32> -> vector<16x256xf32>
    %23 = vector.shape_cast %22 : vector<16x256xf32> to vector<2x8x256xf32>
    %24 = arith.mulf %23, %5 : vector<2x8x256xf32>
    %cst_14 = arith.constant dense<0.000000e+00> : vector<2x256xf32>
    %25 = vector.multi_reduction <add>, %24, %cst_14 [1] : vector<2x8x256xf32> to vector<2x256xf32>
    %26 = arith.mulf %25, %25 : vector<2x256xf32>
    %cst_15 = arith.constant dense<0.000000e+00> : vector<2x16xf32>
    %27 = tpu.matmul %26, %7, %cst_15 {dimension_numbers = #tpu.dot_dimension_numbers<[1], [0], [0], [1], [0, 0, 1, 1], [], []>} : vector<2x256xf32>, vector<256x16xf32>, vector<2x16xf32> -> vector<2x16xf32>
    %cst_16 = arith.constant 1.000000e-07 : f32
    %28 = vector.broadcast %cst_16 : f32 to vector<2x16xf32>
    %29 = arith.addf %27, %28 : vector<2x16xf32>
    %30 = math.rsqrt %29 : vector<2x16xf32>
    %cst_17 = arith.constant dense<0.000000e+00> : vector<2x256xf32>
    %31 = tpu.matmul %30, %6, %cst_17 {dimension_numbers = #tpu.dot_dimension_numbers<[1], [0], [0], [1], [0, 0, 1, 1], [], []>} : vector<2x16xf32>, vector<16x256xf32>, vector<2x256xf32> -> vector<2x256xf32>
    %32 = arith.mulf %25, %31 : vector<2x256xf32>
    %33 = vector.shape_cast %32 : vector<2x256xf32> to vector<2x1x256xf32>
    %34 = vector.broadcast %33 : vector<2x1x256xf32> to vector<2x8x256xf32>
    %35 = arith.mulf %34, %5 : vector<2x8x256xf32>
    %36 = vector.shape_cast %35 : vector<2x8x256xf32> to vector<16x256xf32>
    %cst_18 = arith.constant dense<0.000000e+00> : vector<16x16xf32>
    %37 = tpu.matmul %36, %7, %cst_18 {dimension_numbers = #tpu.dot_dimension_numbers<[1], [0], [0], [1], [0, 0, 1, 1], [], []>} : vector<16x256xf32>, vector<256x16xf32>, vector<16x16xf32> -> vector<16x16xf32>
    %38 = vector.broadcast %8 : vector<1x16xf32> to vector<16x16xf32>
    %39 = arith.addf %37, %38 : vector<16x16xf32>
    %cst_19 = arith.constant dense<0xFF800000> : vector<16xf32>
    %40 = vector.multi_reduction <maximumf>, %39, %cst_19 [1] : vector<16x16xf32> to vector<16xf32>
    %41 = vector.shape_cast %40 : vector<16xf32> to vector<16x1xf32>
    %42 = vector.broadcast %41 : vector<16x1xf32> to vector<16x16xf32>
    %43 = arith.subf %39, %42 : vector<16x16xf32>
    %44 = math.exp %43 : vector<16x16xf32>
    %cst_20 = arith.constant dense<0.000000e+00> : vector<16xf32>
    %45 = vector.multi_reduction <add>, %44, %cst_20 [1] : vector<16x16xf32> to vector<16xf32>
    %46 = vector.shape_cast %45 : vector<16xf32> to vector<16x1xf32>
    %47 = tpu.reciprocal %46 {approx = true} : vector<16x1xf32> -> vector<16x1xf32>
    %48 = vector.broadcast %47 : vector<16x1xf32> to vector<16x16xf32>
    %49 = arith.mulf %44, %48 : vector<16x16xf32>
    %cst_21 = arith.constant dense<0.000000e+00> : vector<16x256xf32>
    %50 = tpu.matmul %49, %6, %cst_21 {dimension_numbers = #tpu.dot_dimension_numbers<[1], [0], [0], [1], [0, 0, 1, 1], [], []>} : vector<16x16xf32>, vector<16x256xf32>, vector<16x256xf32> -> vector<16x256xf32>
    %51 = vector.shape_cast %50 : vector<16x256xf32> to vector<2x8x256xf32>
    %52 = arith.mulf %51, %5 : vector<2x8x256xf32>
    %cst_22 = arith.constant dense<0.000000e+00> : vector<2x256xf32>
    %53 = vector.multi_reduction <add>, %52, %cst_22 [1] : vector<2x8x256xf32> to vector<2x256xf32>
    %54 = arith.mulf %53, %53 : vector<2x256xf32>
    %cst_23 = arith.constant dense<0.000000e+00> : vector<2x16xf32>
    %55 = tpu.matmul %54, %7, %cst_23 {dimension_numbers = #tpu.dot_dimension_numbers<[1], [0], [0], [1], [0, 0, 1, 1], [], []>} : vector<2x256xf32>, vector<256x16xf32>, vector<2x16xf32> -> vector<2x16xf32>
    %cst_24 = arith.constant 1.000000e-07 : f32
    %56 = vector.broadcast %cst_24 : f32 to vector<2x16xf32>
    %57 = arith.addf %55, %56 : vector<2x16xf32>
    %58 = math.rsqrt %57 : vector<2x16xf32>
    %cst_25 = arith.constant dense<0.000000e+00> : vector<2x256xf32>
    %59 = tpu.matmul %58, %6, %cst_25 {dimension_numbers = #tpu.dot_dimension_numbers<[1], [0], [0], [1], [0, 0, 1, 1], [], []>} : vector<2x16xf32>, vector<16x256xf32>, vector<2x256xf32> -> vector<2x256xf32>
    %60 = arith.mulf %53, %59 : vector<2x256xf32>
    %61 = vector.shape_cast %60 : vector<2x256xf32> to vector<2x1x256xf32>
    %62 = vector.broadcast %61 : vector<2x1x256xf32> to vector<2x8x256xf32>
    %63 = arith.mulf %62, %5 : vector<2x8x256xf32>
    %64 = vector.shape_cast %63 : vector<2x8x256xf32> to vector<16x256xf32>
    %cst_26 = arith.constant dense<0.000000e+00> : vector<16x16xf32>
    %65 = tpu.matmul %64, %7, %cst_26 {dimension_numbers = #tpu.dot_dimension_numbers<[1], [0], [0], [1], [0, 0, 1, 1], [], []>} : vector<16x256xf32>, vector<256x16xf32>, vector<16x16xf32> -> vector<16x16xf32>
    %66 = vector.broadcast %8 : vector<1x16xf32> to vector<16x16xf32>
    %67 = arith.addf %65, %66 : vector<16x16xf32>
    %cst_27 = arith.constant dense<0xFF800000> : vector<16xf32>
    %68 = vector.multi_reduction <maximumf>, %67, %cst_27 [1] : vector<16x16xf32> to vector<16xf32>
    %69 = vector.shape_cast %68 : vector<16xf32> to vector<16x1xf32>
    %70 = vector.broadcast %69 : vector<16x1xf32> to vector<16x16xf32>
    %71 = arith.subf %67, %70 : vector<16x16xf32>
    %72 = math.exp %71 : vector<16x16xf32>
    %cst_28 = arith.constant dense<0.000000e+00> : vector<16xf32>
    %73 = vector.multi_reduction <add>, %72, %cst_28 [1] : vector<16x16xf32> to vector<16xf32>
    %74 = vector.shape_cast %73 : vector<16xf32> to vector<16x1xf32>
    %75 = tpu.reciprocal %74 {approx = true} : vector<16x1xf32> -> vector<16x1xf32>
    %76 = vector.broadcast %75 : vector<16x1xf32> to vector<16x16xf32>
    %77 = arith.mulf %72, %76 : vector<16x16xf32>
    %cst_29 = arith.constant dense<0.000000e+00> : vector<16x256xf32>
    %78 = tpu.matmul %77, %6, %cst_29 {dimension_numbers = #tpu.dot_dimension_numbers<[1], [0], [0], [1], [0, 0, 1, 1], [], []>} : vector<16x16xf32>, vector<16x256xf32>, vector<16x256xf32> -> vector<16x256xf32>
    %79 = vector.shape_cast %78 : vector<16x256xf32> to vector<2x8x256xf32>
    %80 = arith.mulf %79, %5 : vector<2x8x256xf32>
    %cst_30 = arith.constant dense<0.000000e+00> : vector<2x256xf32>
    %81 = vector.multi_reduction <add>, %80, %cst_30 [1] : vector<2x8x256xf32> to vector<2x256xf32>
    %82 = arith.mulf %81, %81 : vector<2x256xf32>
    %cst_31 = arith.constant dense<0.000000e+00> : vector<2x16xf32>
    %83 = tpu.matmul %82, %7, %cst_31 {dimension_numbers = #tpu.dot_dimension_numbers<[1], [0], [0], [1], [0, 0, 1, 1], [], []>} : vector<2x256xf32>, vector<256x16xf32>, vector<2x16xf32> -> vector<2x16xf32>
    %cst_32 = arith.constant 1.000000e-07 : f32
    %84 = vector.broadcast %cst_32 : f32 to vector<2x16xf32>
    %85 = arith.addf %83, %84 : vector<2x16xf32>
    %86 = math.rsqrt %85 : vector<2x16xf32>
    %cst_33 = arith.constant dense<0.000000e+00> : vector<2x256xf32>
    %87 = tpu.matmul %86, %6, %cst_33 {dimension_numbers = #tpu.dot_dimension_numbers<[1], [0], [0], [1], [0, 0, 1, 1], [], []>} : vector<2x16xf32>, vector<16x256xf32>, vector<2x256xf32> -> vector<2x256xf32>
    %88 = arith.mulf %81, %87 : vector<2x256xf32>
    %89 = vector.shape_cast %88 : vector<2x256xf32> to vector<2x1x256xf32>
    %90 = vector.broadcast %89 : vector<2x1x256xf32> to vector<2x8x256xf32>
    %91 = arith.mulf %90, %5 : vector<2x8x256xf32>
    %92 = vector.shape_cast %91 : vector<2x8x256xf32> to vector<16x256xf32>
    %cst_34 = arith.constant dense<0.000000e+00> : vector<16x16xf32>
    %93 = tpu.matmul %92, %7, %cst_34 {dimension_numbers = #tpu.dot_dimension_numbers<[1], [0], [0], [1], [0, 0, 1, 1], [], []>} : vector<16x256xf32>, vector<256x16xf32>, vector<16x16xf32> -> vector<16x16xf32>
    %94 = vector.broadcast %8 : vector<1x16xf32> to vector<16x16xf32>
    %95 = arith.addf %93, %94 : vector<16x16xf32>
    %cst_35 = arith.constant dense<0xFF800000> : vector<16xf32>
    %96 = vector.multi_reduction <maximumf>, %95, %cst_35 [1] : vector<16x16xf32> to vector<16xf32>
    %97 = vector.shape_cast %96 : vector<16xf32> to vector<16x1xf32>
    %98 = vector.broadcast %97 : vector<16x1xf32> to vector<16x16xf32>
    %99 = arith.subf %95, %98 : vector<16x16xf32>
    %100 = math.exp %99 : vector<16x16xf32>
    %cst_36 = arith.constant dense<0.000000e+00> : vector<16xf32>
    %101 = vector.multi_reduction <add>, %100, %cst_36 [1] : vector<16x16xf32> to vector<16xf32>
    %102 = vector.shape_cast %101 : vector<16xf32> to vector<16x1xf32>
    %103 = tpu.reciprocal %102 {approx = true} : vector<16x1xf32> -> vector<16x1xf32>
    %104 = vector.broadcast %103 : vector<16x1xf32> to vector<16x16xf32>
    %105 = arith.mulf %100, %104 : vector<16x16xf32>
    %cst_37 = arith.constant dense<0.000000e+00> : vector<16x256xf32>
    %106 = tpu.matmul %105, %6, %cst_37 {dimension_numbers = #tpu.dot_dimension_numbers<[1], [0], [0], [1], [0, 0, 1, 1], [], []>} : vector<16x16xf32>, vector<16x256xf32>, vector<16x256xf32> -> vector<16x256xf32>
    %107 = vector.shape_cast %106 : vector<16x256xf32> to vector<2x8x256xf32>
    %108 = arith.mulf %107, %5 : vector<2x8x256xf32>
    %cst_38 = arith.constant dense<0.000000e+00> : vector<2x256xf32>
    %109 = vector.multi_reduction <add>, %108, %cst_38 [1] : vector<2x8x256xf32> to vector<2x256xf32>
    %110 = arith.mulf %109, %109 : vector<2x256xf32>
    %cst_39 = arith.constant dense<0.000000e+00> : vector<2x16xf32>
    %111 = tpu.matmul %110, %7, %cst_39 {dimension_numbers = #tpu.dot_dimension_numbers<[1], [0], [0], [1], [0, 0, 1, 1], [], []>} : vector<2x256xf32>, vector<256x16xf32>, vector<2x16xf32> -> vector<2x16xf32>
    %cst_40 = arith.constant 1.000000e-07 : f32
    %112 = vector.broadcast %cst_40 : f32 to vector<2x16xf32>
    %113 = arith.addf %111, %112 : vector<2x16xf32>
    %114 = math.rsqrt %113 : vector<2x16xf32>
    %cst_41 = arith.constant dense<0.000000e+00> : vector<2x256xf32>
    %115 = tpu.matmul %114, %6, %cst_41 {dimension_numbers = #tpu.dot_dimension_numbers<[1], [0], [0], [1], [0, 0, 1, 1], [], []>} : vector<2x16xf32>, vector<16x256xf32>, vector<2x256xf32> -> vector<2x256xf32>
    %116 = arith.mulf %109, %115 : vector<2x256xf32>
    %117 = vector.shape_cast %116 : vector<2x256xf32> to vector<2x1x256xf32>
    %118 = vector.broadcast %117 : vector<2x1x256xf32> to vector<2x8x256xf32>
    %119 = arith.mulf %118, %5 : vector<2x8x256xf32>
    %120 = vector.shape_cast %119 : vector<2x8x256xf32> to vector<16x256xf32>
    %cst_42 = arith.constant dense<0.000000e+00> : vector<16x16xf32>
    %121 = tpu.matmul %120, %7, %cst_42 {dimension_numbers = #tpu.dot_dimension_numbers<[1], [0], [0], [1], [0, 0, 1, 1], [], []>} : vector<16x256xf32>, vector<256x16xf32>, vector<16x16xf32> -> vector<16x16xf32>
    %122 = vector.broadcast %8 : vector<1x16xf32> to vector<16x16xf32>
    %123 = arith.addf %121, %122 : vector<16x16xf32>
    %cst_43 = arith.constant dense<0xFF800000> : vector<16xf32>
    %124 = vector.multi_reduction <maximumf>, %123, %cst_43 [1] : vector<16x16xf32> to vector<16xf32>
    %125 = vector.shape_cast %124 : vector<16xf32> to vector<16x1xf32>
    %126 = vector.broadcast %125 : vector<16x1xf32> to vector<16x16xf32>
    %127 = arith.subf %123, %126 : vector<16x16xf32>
    %128 = math.exp %127 : vector<16x16xf32>
    %cst_44 = arith.constant dense<0.000000e+00> : vector<16xf32>
    %129 = vector.multi_reduction <add>, %128, %cst_44 [1] : vector<16x16xf32> to vector<16xf32>
    %130 = vector.shape_cast %129 : vector<16xf32> to vector<16x1xf32>
    %131 = tpu.reciprocal %130 {approx = true} : vector<16x1xf32> -> vector<16x1xf32>
    %132 = vector.broadcast %131 : vector<16x1xf32> to vector<16x16xf32>
    %133 = arith.mulf %128, %132 : vector<16x16xf32>
    %cst_45 = arith.constant dense<0.000000e+00> : vector<16x256xf32>
    %134 = tpu.matmul %133, %6, %cst_45 {dimension_numbers = #tpu.dot_dimension_numbers<[1], [0], [0], [1], [0, 0, 1, 1], [], []>} : vector<16x16xf32>, vector<16x256xf32>, vector<16x256xf32> -> vector<16x256xf32>
    %135 = vector.shape_cast %134 : vector<16x256xf32> to vector<2x8x256xf32>
    %136 = arith.mulf %135, %5 : vector<2x8x256xf32>
    %cst_46 = arith.constant dense<0.000000e+00> : vector<2x256xf32>
    %137 = vector.multi_reduction <add>, %136, %cst_46 [1] : vector<2x8x256xf32> to vector<2x256xf32>
    %138 = arith.mulf %137, %137 : vector<2x256xf32>
    %cst_47 = arith.constant dense<0.000000e+00> : vector<2x16xf32>
    %139 = tpu.matmul %138, %7, %cst_47 {dimension_numbers = #tpu.dot_dimension_numbers<[1], [0], [0], [1], [0, 0, 1, 1], [], []>} : vector<2x256xf32>, vector<256x16xf32>, vector<2x16xf32> -> vector<2x16xf32>
    %cst_48 = arith.constant 1.000000e-07 : f32
    %140 = vector.broadcast %cst_48 : f32 to vector<2x16xf32>
    %141 = arith.addf %139, %140 : vector<2x16xf32>
    %142 = math.rsqrt %141 : vector<2x16xf32>
    %cst_49 = arith.constant dense<0.000000e+00> : vector<2x256xf32>
    %143 = tpu.matmul %142, %6, %cst_49 {dimension_numbers = #tpu.dot_dimension_numbers<[1], [0], [0], [1], [0, 0, 1, 1], [], []>} : vector<2x16xf32>, vector<16x256xf32>, vector<2x256xf32> -> vector<2x256xf32>
    %144 = arith.mulf %137, %143 : vector<2x256xf32>
    %c0_50 = arith.constant 0 : index
    %c0_51 = arith.constant 0 : index
    %c0_52 = arith.constant 0 : index
    %145 = vector.load %arg6[%c0_50, %c0_51, %c0_52] : memref<1x2x256xf32, #tpu.memory_space<vmem>>, vector<1x2x256xf32>
    %146 = vector.shape_cast %145 : vector<1x2x256xf32> to vector<2x256xf32>
    %147 = vector.shape_cast %144 : vector<2x256xf32> to vector<1x2x256xf32>
    tpu.vector_store %arg6[%c0_50, %c0_51, %c0_52], %147 {strides = array<i32>} : memref<1x2x256xf32, #tpu.memory_space<vmem>>, vector<1x2x256xf32>,
    return
  }
  func.func @transform_0(%arg0: i32) -> (i32, i32, i32) {
    %c0_i32 = arith.constant 0 : i32
    %c0_i32_0 = arith.constant 0 : i32
    %c0_i32_1 = arith.constant 0 : i32
    return %arg0, %c0_i32, %c0_i32_0 : i32, i32, i32
  }
  func.func @transform_1(%arg0: i32) -> (i32, i32) {
    %c0_i32 = arith.constant 0 : i32
    %c0_i32_0 = arith.constant 0 : i32
    %c0_i32_1 = arith.constant 0 : i32
    return %c0_i32, %c0_i32_0 : i32, i32
  }
  func.func @transform_2(%arg0: i32) -> (i32, i32) {
    %c0_i32 = arith.constant 0 : i32
    %c0_i32_0 = arith.constant 0 : i32
    %c0_i32_1 = arith.constant 0 : i32
    return %c0_i32, %c0_i32_0 : i32, i32
  }
  func.func @transform_3(%arg0: i32) -> (i32, i32) {
    %c0_i32 = arith.constant 0 : i32
    %c0_i32_0 = arith.constant 0 : i32
    %c0_i32_1 = arith.constant 0 : i32
    return %c0_i32, %c0_i32_0 : i32, i32
  }
  func.func @transform_4(%arg0: i32) -> (i32, i32) {
    %c0_i32 = arith.constant 0 : i32
    %c0_i32_0 = arith.constant 0 : i32
    %c0_i32_1 = arith.constant 0 : i32
    return %c0_i32, %c0_i32_0 : i32, i32
  }
  func.func @transform_5(%arg0: i32) -> (i32, i32, i32) {
    %c0_i32 = arith.constant 0 : i32
    %c0_i32_0 = arith.constant 0 : i32
    %c0_i32_1 = arith.constant 0 : i32
    return %arg0, %c0_i32, %c0_i32_0 : i32, i32, i32
  }
}

</mosaic_0001>

<bundles_post_ra>
// kernel: tpu_custom_call.1
= control target key start
LH: loop header
LB: loop body
LE: loop exit
PB: predicated region body
PF: predicated region fallthrough
CT: control target
= control target key end

     0   :  { %vm140_vm0 = vcmask 130048   ;;  %s3442_s0 = inlined_call_operand.vmem [shape: f32[1,16,32], index: 0, kind: input, shape index: {}]   ;;  %s3443_s1 = inlined_call_operand.vmem [shape: bf16[32,256], index: 1, kind: input, shape index: {}]   ;;  %s3444_s2 = inlined_call_operand.vmem [shape: f32[16,256], index: 2, kind: input, shape index: {}]   ;;  %s3445_s3 = inlined_call_operand.vmem [shape: f32[256,16], index: 3, kind: input, shape index: {}]   ;;  %s3446_s4 = inlined_call_operand.vmem [shape: f32[1,16], index: 4, kind: input, shape index: {}]   ;;  %s3447_s5 = inlined_call_operand.hbm [shape: f32[1,2,256], index: 5, kind: output, shape index: {}]  }
   0x1   :  { %v2566_v0 = vld [vmem:[%s3446_s4] ss:$0 sm:$0xff] }
   0x2   :  { %3472 = vst [vmem:[#allocation5_spill] sm:$0xff] %v2566_v0  ;;  %v141_v1 = vsel %vm140_vm0, %v2566_v0, -inf }
   0x3   :  { %10 = vsyncpa [#allocation3], 0  ;;  %142 = vmax.xlane.f32.xlu0 %v141_v1  ;;  %v2418_v7 = vld [vmem:[%s3443_s1 + $0x14] ss:$8 sps:$4 sm:$0xff]   ;;  %v2420_v8 = vld [vmem:[%s3443_s1 + $0x10] ss:$8 sps:$4 sm:$0xff]  }
   0x4   :  { %v2421_v9 = vld [vmem:[%s3443_s1 + $0x4] ss:$8 sps:$4 sm:$0xff]   ;;  %v2423_v10 = vld [vmem:[%s3443_s1] ss:$8 sps:$4 sm:$0xff]   ;;  %65 = vmatprep.subr.bf16.mxu0 %v2418_v7  ;;  %v2529_v11 = vmov 0   ;;  %v2587_v12 = vld [vmem:[%s3444_s2 + $0x18] sm:$0xff] }
   0x5   :  { %85 = vmatprep.mubr.bf16.mxu0 %v2529_v11  ;;  %v2592_v13 = vld [vmem:[%s3444_s2 + $0x10] sm:$0xff]  ;;  %v2597_v14 = vld [vmem:[%s3444_s2 + $0x8] sm:$0xff]  ;;  %66 = vmatpush1.bf16.msra.mxu0 %v2420_v8  ;;  %v22_v15 = vld [vmem:[%s3442_s0] sm:$0xff]  ;;  %v3448_v18 = vmov 0.0   ;;  %vm49_vm1 = vcmask 261120   ;;  %vm268_vm2 = vcmask 1041409  }
   0x6   :  { %v23_v16 = vld [vmem:[%s3442_s0 + $0x8] sm:$0xff]  ;;  %183 = vmatprep.subr.mxu1 %v2587_v12  ;;  %v2609_v17 = vld [vmem:[%s3444_s2] sm:$0xff]  ;;  %67 = vmatprep.subr.bf16.mxu0 %v2421_v9  ;;  %v2623_v20 = vld [vmem:[%s3445_s3 + $0xf8] sm:$0xff]  ;;  %vm2044_vm3 = vcmask 1043459   ;;  %vm2046_vm4 = vcmask 1045509   ;;  %vm2048_vm5 = vcmask 1047559  }
   0x7   :  { %184 = vmatpush1.msra.mxu1 %v2592_v13  ;;  %219 = vmatprep.mubr.f32.mxu1 %v3448_v18  ;;  %v24_v19 = vpack.c.bf16 %v23_v16, %v22_v15  ;;  %v2630_v24 = vld [vmem:[%s3445_s3 + $0x78] sm:$0xff]  ;;  %v2635_v25 = vld [vmem:[%s3445_s3 + $0xf0] sm:$0xff]  ;;  %v2648_v27 = vld [vmem:[%s3445_s3 + $0xe8] sm:$0xff] }
   0x8   :  { %185 = vmatprep.subr.mxu1 %v2597_v14  ;;  %v2641_v26 = vld [vmem:[%s3445_s3 + $0x70] sm:$0xff]  ;;  %v2654_v28 = vld [vmem:[%s3445_s3 + $0x68] sm:$0xff]  ;;  %v2660_v29 = vld [vmem:[%s3445_s3 + $0xe0] sm:$0xff] }
   0x9   :  { %186 = vmatpush1.msra.mxu1 %v2609_v17  ;;  %68 = vmatpush1.bf16.msra.mxu0 %v2423_v10  ;;  %v2669_v30 = vld [vmem:[%s3445_s3 + $0x60] sm:$0xff]  ;;  %v2675_v31 = vld [vmem:[%s3445_s3 + $0xd8] sm:$0xff]  ;;  %v2687_v33 = vld [vmem:[%s3445_s3 + $0xd0] sm:$0xff] }
   0xa   :  { %375 = vmatprep.subr.mxu0 %v2587_v12  ;;  %2087 = vmatprep.subr.mxu1 %v2623_v20  ;;  %v2681_v32 = vld [vmem:[%s3445_s3 + $0x58] sm:$0xff]  ;;  %v2693_v34 = vld [vmem:[%s3445_s3 + $0x50] sm:$0xff]  ;;  %v2699_v35 = vld [vmem:[%s3445_s3 + $0xc8] sm:$0xff] }
   0xb   :  { %v2705_v36 = vld [vmem:[%s3445_s3 + $0x48] sm:$0xff]  ;;  %v2711_v37 = vld [vmem:[%s3445_s3 + $0xc0] sm:$0xff]  ;;  %v2723_v39 = vld [vmem:[%s3445_s3 + $0xb8] sm:$0xff] }
   0xc   :  { %2070 = vmatmul.mubr.msk.bf16.vlgmr.msra.gmra.mxu0 %vm49_vm1, %v24_v19  ;;  %v2717_v38 = vld [vmem:[%s3445_s3 + $0x40] sm:$0xff]  ;;  %v2729_v40 = vld [vmem:[%s3445_s3 + $0x38] sm:$0xff]  ;;  %v2735_v41 = vld [vmem:[%s3445_s3 + $0xb0] sm:$0xff] }
   0xd   :  { %376 = vmatpush1.msra.mxu0 %v2592_v13  ;;  %411 = vmatprep.mubr.f32.mxu0 %v3448_v18  ;;  %v2741_v42 = vld [vmem:[%s3445_s3 + $0x30] sm:$0xff]  ;;  %v2747_v43 = vld [vmem:[%s3445_s3 + $0xa8] sm:$0xff]  ;;  %v2759_v45 = vld [vmem:[%s3445_s3 + $0xa0] sm:$0xff] }
   0xe   :  { %377 = vmatprep.subr.mxu0 %v2597_v14  ;;  %v2753_v44 = vld [vmem:[%s3445_s3 + $0x28] sm:$0xff]  ;;  %v2765_v46 = vld [vmem:[%s3445_s3 + $0x20] sm:$0xff]  ;;  %v2771_v47 = vld [vmem:[%s3445_s3 + $0x98] sm:$0xff] }
   0xf   :  { %378 = vmatpush1.msra.mxu0 %v2609_v17  ;;  %v2777_v48 = vld [vmem:[%s3445_s3 + $0x18] sm:$0xff]  ;;  %v2783_v49 = vld [vmem:[%s3445_s3 + $0x90] sm:$0xff]  ;;  %v2794_v51 = vld [vmem:[%s3445_s3 + $0x88] sm:$0xff] }
  0x10   :  { %2122 = vmatprep.subr.mxu0 %v2623_v20  ;;  %v2789_v50 = vld [vmem:[%s3445_s3 + $0x10] sm:$0xff]  ;;  %v2799_v52 = vld [vmem:[%s3445_s3 + $0x8] sm:$0xff]  ;;  %v2805_v53 = vld [vmem:[%s3445_s3 + $0x80] sm:$0xff] }
  0x11   :  { %v2811_v54 = vld [vmem:[%s3445_s3] sm:$0xff] }
  0x8c   :  { %v143_v2 = vpop.xlane.xlu0 %142 }
  0x8d   :  { %v144_v3 = vsub.f32 %v2566_v0, %v143_v2 }
  0x8f   :  { %v145_v4 = vmul.f32 1.442695, %v144_v3 }
  0x91   :  { %2424 = vpow2.f32 %v145_v4 }
  0x9e   :  { %v2425_v5 = vpop.eup %2424 }
  0x9f   :  { %v147_v6 = vsel %vm140_vm0, %v2425_v5, 0.0 }
  0xa0   :  { %148 = vadd.xlane.f32.xlu0 %v147_v6 }
  0xcc   :  { %v2817_v55 = vpop.f32.mrf.mxu0 }
  0xcd   :  { %3473 = vst [vmem:[#allocation6_spill] sm:$0xff] %v2817_v55 }
  0xce   :  { %v2819_v56 = vpop.f32.mrf.mxu0 }
  0xcf   :  { %3474 = vst [vmem:[#allocation7_spill] sm:$0xff] %v2819_v56 }
  0xd0   :  { %v2822_v59 = vpop.f32.mrf.mxu0 }
  0xd1   :  { %3475 = vst [vmem:[#allocation8_spill] sm:$0xff] %v2822_v59 }
  0xd2   :  { %v2826_v4 = vpop.f32.mrf.mxu0 }
  0xd3   :  { %3476 = vst [vmem:[#allocation9_spill] sm:$0xff] %v2826_v4 }
 0x129   :  { %v149_v21 = vpop.xlane.xlu0 %148 }
 0x12a   :  { %2426 = vrcp.f32 %v149_v21 }
 0x137   :  { %v2427_v22 = vpop.eup %2426 }
 0x138   :  { %v151_v23 = vmul.f32 %v2427_v22, %v2425_v5 }
 0x13a   :  { %2072 = vmatmul.mubr.msk.f32.vlgmr.msra.gmra.mxu1 %vm140_vm0, %v151_v23 }
 0x13b   :  { %225 = vmatprep.mubr.f32.mxu1 %v3448_v18  ;;  %2088 = vmatpush3.msra.mxu1 %v2630_v24 }
 0x13c   :  { %2089 = vmatprep.subr.mxu1 %v2635_v25 }
 0x13d   :  { %2090 = vmatpush3.msra.mxu1 %v2641_v26 }
 0x13e   :  { %2073 = vmatmul.mubr.msk.f32.gmra.mxu1 %vm140_vm0, %v151_v23  ;;  %2091 = vmatprep.subr.mxu1 %v2648_v27 }
 0x13f   :  { %2092 = vmatpush3.msra.mxu1 %v2654_v28 }
 0x140   :  { %2093 = vmatprep.subr.mxu1 %v2660_v29 }
 0x141   :  { %2094 = vmatpush3.msra.mxu1 %v2669_v30 }
 0x142   :  { %2095 = vmatprep.subr.mxu1 %v2675_v31 }
 0x143   :  { %2096 = vmatpush3.msra.mxu1 %v2681_v32 }
 0x144   :  { %2097 = vmatprep.subr.mxu1 %v2687_v33 }
 0x145   :  { %2098 = vmatpush3.msra.mxu1 %v2693_v34 }
 0x146   :  { %2099 = vmatprep.subr.mxu1 %v2699_v35 }
 0x147   :  { %2100 = vmatpush3.msra.mxu1 %v2705_v36 }
 0x148   :  { %2101 = vmatprep.subr.mxu1 %v2711_v37 }
 0x149   :  { %2102 = vmatpush3.msra.mxu1 %v2717_v38 }
 0x14a   :  { %2103 = vmatprep.subr.mxu1 %v2723_v39 }
 0x14b   :  { %2104 = vmatpush3.msra.mxu1 %v2729_v40 }
 0x14c   :  { %2105 = vmatprep.subr.mxu1 %v2735_v41 }
 0x14d   :  { %2106 = vmatpush3.msra.mxu1 %v2741_v42 }
 0x14e   :  { %2107 = vmatprep.subr.mxu1 %v2747_v43 }
 0x14f   :  { %2108 = vmatpush3.msra.mxu1 %v2753_v44 }
 0x150   :  { %2109 = vmatprep.subr.mxu1 %v2759_v45 }
 0x151   :  { %2110 = vmatpush3.msra.mxu1 %v2765_v46 }
 0x152   :  { %2111 = vmatprep.subr.mxu1 %v2771_v47 }
 0x153   :  { %2112 = vmatpush3.msra.mxu1 %v2777_v48 }
 0x154   :  { %2113 = vmatprep.subr.mxu1 %v2783_v49 }
 0x155   :  { %2114 = vmatpush3.msra.mxu1 %v2789_v50 }
 0x156   :  { %2115 = vmatprep.subr.mxu1 %v2794_v51 }
 0x157   :  { %2116 = vmatpush3.msra.mxu1 %v2799_v52 }
 0x158   :  { %2117 = vmatprep.subr.mxu1 %v2805_v53 }
 0x159   :  { %2118 = vmatpush3.msra.mxu1 %v2811_v54 }
 0x15a   :  { %581 = vmatprep.subr.mxu1 %v2587_v12 }
 0x1fa   :  { %v221_v57 = vpop.f32.mrf.mxu1 }
 0x1fb   :  { %v232_v58 = vmul.f32 %v221_v57, %v2817_v55 }
 0x1fc   :  { %v223_v60 = vpop.f32.mrf.mxu1 }
 0x1fd   :  { %v236_v61 = vrot.slane %v232_v58, 4  ;;  %v233_v62 = vmul.f32 %v223_v60, %v2819_v56 }
 0x1fe   :  { %v227_v63 = vpop.f32.mrf.mxu1 }
 0x1ff   :  { %v237_v1 = vadd.f32 %v236_v61, %v232_v58  ;;  %v242_v2 = vrot.slane %v233_v62, 4  ;;  %v234_v3 = vmul.f32 %v227_v63, %v2822_v59 }
 0x200   :  { %v229_v5 = vpop.f32.mrf.mxu1 }
 0x201   :  { %v238_v6 = vrot.slane %v237_v1, 2  ;;  %v243_v7 = vadd.f32 %v242_v2, %v233_v62  ;;  %v248_v8 = vrot.slane %v234_v3, 4  ;;  %v235_v9 = vmul.f32 %v229_v5, %v2826_v4 }
 0x203   :  { %v244_v10 = vrot.slane %v243_v7, 2  ;;  %v249_v11 = vadd.f32 %v248_v8, %v234_v3  ;;  %v254_v15 = vrot.slane %v235_v9, 4  ;;  %v239_v16 = vadd.f32 %v238_v6, %v237_v1 }
 0x205   :  { %v245_v19 = vadd.f32 %v244_v10, %v243_v7  ;;  %v250_v21 = vrot.slane %v249_v11, 2  ;;  %v255_v22 = vadd.f32 %v254_v15, %v235_v9  ;;  %v240_v60 = vrot.slane %v239_v16, 1 }
 0x206   :  { %v3477_v10 = vmov 0.0  }
 0x207   :  { %v246_v23 = vrot.slane %v245_v19, 1  ;;  %v251_v57 = vadd.f32 %v250_v21, %v249_v11  ;;  %v256_v58 = vrot.slane %v255_v22, 2  ;;  %v241_v2 = vadd.f32 %v240_v60, %v239_v16 }
 0x209   :  { %v252_v61 = vrot.slane %v251_v57, 1  ;;  %v257_v63 = vadd.f32 %v256_v58, %v255_v22  ;;  %v2829_v18 = vadd.f32 %v246_v23, %v245_v19  ;;  %v260_v7 = vmul.f32 %v241_v2, %v241_v2 }
 0x20a   :  { %v430_v22 = vlaneseq }
 0x20b   :  { %v2831_v0 = vadd.f32 %v252_v61, %v251_v57  ;;  %v258_v62 = vrot.slane %v257_v63, 1  ;;  %v261_v3 = vmul.f32 %v2829_v18, %v2829_v18 }
 0x20c   :  { %v2881_v23 = vshrl.u32 %v430_v22, 7  ;;  %v3480_v22 = vld [vmem:[#allocation5_spill] sm:$0xff] }
 0x20d   :  { %v2833_v5 = vadd.f32 %v258_v62, %v257_v63  ;;  %v262_v1 = vmul.f32 %v2831_v0, %v2831_v0 }
 0x20e   :  { %3478 = vst [vmem:[#allocation10_spill] sm:$0xff] %v2881_v23  ;;  %v2884_v58 = vsub.s32 0, %v2881_v23 }
 0x20f   :  { %v263_v6 = vmul.f32 %v2833_v5, %v2833_v5  ;;  %v269_v9 = vsel %vm268_vm2, %v262_v1, %v260_v7 }
 0x210   :  { %3479 = vst [vmem:[#allocation11_spill] sm:$0xff] %v2884_v58 }
 0x211   :  { %v270_v8 = vsel %vm268_vm2, %v263_v6, %v261_v3 }
 0x212   :  { %337 = vmatprep.mubr.f32.mxu1 %v270_v8 }
 0x213   :  { %338 = vmatmul.mubr.f32.vlgmr.msra.gmra.mxu1 %v269_v9 }
 0x214   :  { %582 = vmatpush1.msra.mxu1 %v2592_v13  ;;  %617 = vmatprep.mubr.f32.mxu1 %v3477_v10 }
 0x215   :  { %583 = vmatprep.subr.mxu1 %v2597_v14 }
 0x216   :  { %584 = vmatpush1.msra.mxu1 %v2609_v17 }
 0x217   :  { %2160 = vmatprep.subr.mxu1 %v2623_v20 }
 0x2d3   :  { %v2119_v11 = vpop.f32.mrf.mxu1 }
 0x2d5   :  { %v2120_v15 = vpop.f32.mrf.mxu1 }
 0x2d6   :  { %v2121_v16 = vadd.f32 %v2120_v15, %v2119_v11 }
 0x2d8   :  { %v340_v19 = vadd.f32 1e-07, %v2121_v16 }
 0x2da   :  { %2428 = vrsqrt.f32 %v340_v19 }
 0x2e7   :  { %v2429_v21 = vpop.eup %2428 }
 0x2e8   :  { %2074 = vmatmul.mubr.msk.f32.vlgmr.msra.gmra.mxu0 %vm140_vm0, %v2429_v21 }
 0x2e9   :  { %2123 = vmatpush3.msra.mxu0 %v2630_v24 }
 0x2ea   :  { %2124 = vmatprep.subr.mxu0 %v2635_v25 }
 0x2eb   :  { %2125 = vmatpush3.msra.mxu0 %v2641_v26 }
 0x2ec   :  { %2126 = vmatprep.subr.mxu0 %v2648_v27 }
 0x2ed   :  { %2127 = vmatpush3.msra.mxu0 %v2654_v28 }
 0x2ee   :  { %2128 = vmatprep.subr.mxu0 %v2660_v29 }
 0x2ef   :  { %2129 = vmatpush3.msra.mxu0 %v2669_v30 }
 0x2f0   :  { %2130 = vmatprep.subr.mxu0 %v2675_v31 }
 0x2f1   :  { %2131 = vmatpush3.msra.mxu0 %v2681_v32 }
 0x2f2   :  { %2132 = vmatprep.subr.mxu0 %v2687_v33 }
 0x2f3   :  { %2133 = vmatpush3.msra.mxu0 %v2693_v34 }
 0x2f4   :  { %2134 = vmatprep.subr.mxu0 %v2699_v35 }
 0x2f5   :  { %2135 = vmatpush3.msra.mxu0 %v2705_v36 }
 0x2f6   :  { %2136 = vmatprep.subr.mxu0 %v2711_v37 }
 0x2f7   :  { %2137 = vmatpush3.msra.mxu0 %v2717_v38 }
 0x2f8   :  { %2138 = vmatprep.subr.mxu0 %v2723_v39 }
 0x2f9   :  { %2139 = vmatpush3.msra.mxu0 %v2729_v40 }
 0x2fa   :  { %2140 = vmatprep.subr.mxu0 %v2735_v41 }
 0x2fb   :  { %2141 = vmatpush3.msra.mxu0 %v2741_v42 }
 0x2fc   :  { %2142 = vmatprep.subr.mxu0 %v2747_v43 }
 0x2fd   :  { %2143 = vmatpush3.msra.mxu0 %v2753_v44 }
 0x2fe   :  { %2144 = vmatprep.subr.mxu0 %v2759_v45 }
 0x2ff   :  { %2145 = vmatpush3.msra.mxu0 %v2765_v46 }
 0x300   :  { %2146 = vmatprep.subr.mxu0 %v2771_v47 }
 0x301   :  { %2147 = vmatpush3.msra.mxu0 %v2777_v48 }
 0x302   :  { %2148 = vmatprep.subr.mxu0 %v2783_v49 }
 0x303   :  { %2149 = vmatpush3.msra.mxu0 %v2789_v50 }
 0x304   :  { %2150 = vmatprep.subr.mxu0 %v2794_v51 }
 0x305   :  { %2151 = vmatpush3.msra.mxu0 %v2799_v52 }
 0x306   :  { %2152 = vmatprep.subr.mxu0 %v2805_v53 }
 0x307   :  { %2153 = vmatpush3.msra.mxu0 %v2811_v54 }
 0x308   :  { %772 = vmatprep.subr.mxu0 %v2587_v12 }
 0x3a8   :  { %v413_v57 = vpop.f32.mrf.mxu0 }
 0x3a9   :  { %v420_v60 = vrot.slane %v413_v57, 1  ;;  %v426_v61 = vmul.f32 %v413_v57, %v241_v2 }
 0x3aa   :  { %v415_v63 = vpop.f32.mrf.mxu0 }
 0x3ab   :  { %v421_v62 = vrot.slane %v415_v63, 1  ;;  %v427_v1 = vmul.f32 %v415_v63, %v2829_v18  ;;  %v428_v3 = vmul.f32 %v420_v60, %v2831_v0  ;;  %v433_v6 = vrot.slane %v426_v61, %v2884_v58 }
 0x3ad   :  { %v429_v7 = vmul.f32 %v421_v62, %v2833_v5  ;;  %v437_v8 = vrot.slane %v427_v1, %v2884_v58  ;;  %v441_v15 = vrot.slane %v428_v3, %v2884_v58  ;;  %v446_v2 = vmul.f32 %v433_v6, %v2817_v55 }
 0x3af   :  { %v445_v9 = vrot.slane %v429_v7, %v2884_v58  ;;  %v447_v11 = vmul.f32 %v437_v8, %v2819_v56  ;;  %v448_v0 = vmul.f32 %v441_v15, %v2822_v59 }
 0x3b1   :  { %514 = vmatprep.mubr.f32.mxu0 %v447_v11  ;;  %v449_v16 = vmul.f32 %v445_v9, %v2826_v4 }
 0x3b2   :  { %515 = vmatmul.mubr.f32.vlgmr.msra.gmra.mxu0 %v446_v2 }
 0x3b3   :  { %519 = vmatprep.mubr.f32.mxu0 %v449_v16  ;;  %773 = vmatpush1.msra.mxu0 %v2592_v13 }
 0x3b4   :  { %774 = vmatprep.subr.mxu0 %v2597_v14 }
 0x3b5   :  { %775 = vmatpush1.msra.mxu0 %v2609_v17 }
 0x3b6   :  { %520 = vmatmul.mubr.f32.gmra.mxu0 %v448_v0  ;;  %2195 = vmatprep.subr.mxu0 %v2623_v20 }
 0x3b7   :  { %808 = vmatprep.mubr.f32.mxu0 %v3477_v10 }
 0x472   :  { %v2154_v18 = vpop.f32.mrf.mxu0 }
 0x474   :  { %v2155_v5 = vpop.f32.mrf.mxu0 }
 0x475   :  { %v2156_v19 = vadd.f32 %v2155_v5, %v2154_v18 }
 0x476   :  { %v2157_v21 = vpop.f32.mrf.mxu0 }
 0x477   :  { %v517_v57 = vadd.f32 %v2156_v19, %v3480_v22 }
 0x478   :  { %v2158_v60 = vpop.f32.mrf.mxu0 }
 0x479   :  { %v2159_v61 = vadd.f32 %v2158_v60, %v2157_v21  ;;  %v525_v63 = vsel %vm140_vm0, %v517_v57, -inf }
 0x47a   :  { %526 = vmax.xlane.f32.xlu1 %v525_v63 }
 0x47b   :  { %v522_v62 = vadd.f32 %v2159_v61, %v3480_v22 }
 0x47d   :  { %v528_v1 = vsel %vm140_vm0, %v522_v62, -inf }
 0x47e   :  { %529 = vmax.xlane.f32.xlu1 %v528_v1 }
 0x503   :  { %v527_v3 = vpop.xlane.xlu1 %526 }
 0x504   :  { %v531_v6 = vsub.f32 %v517_v57, %v527_v3 }
 0x506   :  { %v533_v7 = vmul.f32 1.442695, %v531_v6 }
 0x507   :  { %v530_v8 = vpop.xlane.xlu1 %529 }
 0x508   :  { %2430 = vpow2.f32 %v533_v7  ;;  %v532_v9 = vsub.f32 %v522_v62, %v530_v8 }
 0x50a   :  { %v535_v11 = vmul.f32 1.442695, %v532_v9 }
 0x50c   :  { %2432 = vpow2.f32 %v535_v11 }
 0x515   :  { %v2431_v15 = vpop.eup %2430 }
 0x516   :  { %v537_v2 = vsel %vm140_vm0, %v2431_v15, 0.0 }
 0x517   :  { %538 = vadd.xlane.f32.xlu0 %v537_v2 }
 0x519   :  { %v2433_v16 = vpop.eup %2432 }
 0x51a   :  { %v540_v0 = vsel %vm140_vm0, %v2433_v16, 0.0 }
 0x51b   :  { %541 = vadd.xlane.f32.xlu1 %v540_v0 }
 0x5a0   :  { %v539_v18 = vpop.xlane.xlu0 %538 }
 0x5a1   :  { %2434 = vrcp.f32 %v539_v18 }
 0x5a4   :  { %v542_v5 = vpop.xlane.xlu1 %541 }
 0x5a5   :  { %2436 = vrcp.f32 %v542_v5 }
 0x5ae   :  { %v2435_v19 = vpop.eup %2434 }
 0x5af   :  { %v545_v21 = vmul.f32 %v2435_v19, %v2431_v15 }
 0x5b1   :  { %2075 = vmatmul.mubr.msk.f32.vlgmr.msra.gmra.mxu1 %vm140_vm0, %v545_v21 }
 0x5b2   :  { %v2437_v57 = vpop.eup %2436  ;;  %623 = vmatprep.mubr.f32.mxu1 %v3477_v10  ;;  %2161 = vmatpush3.msra.mxu1 %v2630_v24 }
 0x5b3   :  { %v546_v60 = vmul.f32 %v2437_v57, %v2433_v16  ;;  %2162 = vmatprep.subr.mxu1 %v2635_v25 }
 0x5b4   :  { %2163 = vmatpush3.msra.mxu1 %v2641_v26 }
 0x5b5   :  { %2076 = vmatmul.mubr.msk.f32.gmra.mxu1 %vm140_vm0, %v546_v60  ;;  %2164 = vmatprep.subr.mxu1 %v2648_v27 }
 0x5b6   :  { %2165 = vmatpush3.msra.mxu1 %v2654_v28 }
 0x5b7   :  { %2166 = vmatprep.subr.mxu1 %v2660_v29 }
 0x5b8   :  { %2167 = vmatpush3.msra.mxu1 %v2669_v30 }
 0x5b9   :  { %2168 = vmatprep.subr.mxu1 %v2675_v31 }
 0x5ba   :  { %2169 = vmatpush3.msra.mxu1 %v2681_v32 }
 0x5bb   :  { %2170 = vmatprep.subr.mxu1 %v2687_v33 }
 0x5bc   :  { %2171 = vmatpush3.msra.mxu1 %v2693_v34 }
 0x5bd   :  { %2172 = vmatprep.subr.mxu1 %v2699_v35 }
 0x5be   :  { %2173 = vmatpush3.msra.mxu1 %v2705_v36 }
 0x5bf   :  { %2174 = vmatprep.subr.mxu1 %v2711_v37 }
 0x5c0   :  { %2175 = vmatpush3.msra.mxu1 %v2717_v38 }
 0x5c1   :  { %2176 = vmatprep.subr.mxu1 %v2723_v39 }
 0x5c2   :  { %2177 = vmatpush3.msra.mxu1 %v2729_v40 }
 0x5c3   :  { %2178 = vmatprep.subr.mxu1 %v2735_v41 }
 0x5c4   :  { %2179 = vmatpush3.msra.mxu1 %v2741_v42 }
 0x5c5   :  { %2180 = vmatprep.subr.mxu1 %v2747_v43 }
 0x5c6   :  { %2181 = vmatpush3.msra.mxu1 %v2753_v44 }
 0x5c7   :  { %2182 = vmatprep.subr.mxu1 %v2759_v45 }
 0x5c8   :  { %2183 = vmatpush3.msra.mxu1 %v2765_v46 }
 0x5c9   :  { %2184 = vmatprep.subr.mxu1 %v2771_v47 }
 0x5ca   :  { %2185 = vmatpush3.msra.mxu1 %v2777_v48 }
 0x5cb   :  { %2186 = vmatprep.subr.mxu1 %v2783_v49 }
 0x5cc   :  { %2187 = vmatpush3.msra.mxu1 %v2789_v50 }
 0x5cd   :  { %2188 = vmatprep.subr.mxu1 %v2794_v51 }
 0x5ce   :  { %2189 = vmatpush3.msra.mxu1 %v2799_v52 }
 0x5cf   :  { %2190 = vmatprep.subr.mxu1 %v2805_v53 }
 0x5d0   :  { %2191 = vmatpush3.msra.mxu1 %v2811_v54 }
 0x5d1   :  { %978 = vmatprep.subr.mxu1 %v2587_v12 }
 0x671   :  { %v619_v61 = vpop.f32.mrf.mxu1 }
 0x672   :  { %v630_v63 = vmul.f32 %v619_v61, %v2817_v55 }
 0x673   :  { %v621_v62 = vpop.f32.mrf.mxu1 }
 0x674   :  { %v634_v1 = vrot.slane %v630_v63, 4  ;;  %v631_v3 = vmul.f32 %v621_v62, %v2819_v56 }
 0x675   :  { %v625_v6 = vpop.f32.mrf.mxu1 }
 0x676   :  { %v635_v7 = vadd.f32 %v634_v1, %v630_v63  ;;  %v640_v8 = vrot.slane %v631_v3, 4  ;;  %v632_v9 = vmul.f32 %v625_v6, %v2822_v59 }
 0x677   :  { %v627_v11 = vpop.f32.mrf.mxu1 }
 0x678   :  { %v636_v15 = vrot.slane %v635_v7, 2  ;;  %v641_v2 = vadd.f32 %v640_v8, %v631_v3  ;;  %v646_v16 = vrot.slane %v632_v9, 4  ;;  %v633_v0 = vmul.f32 %v627_v11, %v2826_v4 }
 0x67a   :  { %v642_v18 = vrot.slane %v641_v2, 2  ;;  %v647_v5 = vadd.f32 %v646_v16, %v632_v9  ;;  %v652_v19 = vrot.slane %v633_v0, 4  ;;  %v637_v21 = vadd.f32 %v636_v15, %v635_v7 }
 0x67c   :  { %v643_v57 = vadd.f32 %v642_v18, %v641_v2  ;;  %v648_v60 = vrot.slane %v647_v5, 2  ;;  %v653_v61 = vadd.f32 %v652_v19, %v633_v0  ;;  %v638_v63 = vrot.slane %v637_v21, 1 }
 0x67e   :  { %v644_v23 = vrot.slane %v643_v57, 1  ;;  %v649_v62 = vadd.f32 %v648_v60, %v647_v5  ;;  %v654_v22 = vrot.slane %v653_v61, 2  ;;  %v639_v3 = vadd.f32 %v638_v63, %v637_v21  ;;  %v3481_v21 = vld [vmem:[#allocation11_spill] sm:$0xff] }
 0x67f   :  { %v3482_v63 = vld [vmem:[#allocation7_spill] sm:$0xff] }
 0x680   :  { %v650_v1 = vrot.slane %v649_v62, 1  ;;  %v655_v55 = vadd.f32 %v654_v22, %v653_v61  ;;  %v645_v6 = vadd.f32 %v644_v23, %v643_v57  ;;  %v658_v9 = vmul.f32 %v639_v3, %v639_v3 }
 0x682   :  { %v651_v59 = vadd.f32 %v650_v1, %v649_v62  ;;  %v656_v56 = vrot.slane %v655_v55, 1  ;;  %v659_v11 = vmul.f32 %v645_v6, %v645_v6 }
 0x684   :  { %v657_v8 = vadd.f32 %v656_v56, %v655_v55  ;;  %v660_v58 = vmul.f32 %v651_v59, %v651_v59 }
 0x686   :  { %v661_v4 = vmul.f32 %v657_v8, %v657_v8  ;;  %v666_v15 = vsel %vm268_vm2, %v660_v58, %v658_v9  ;;  %v3483_v9 = vld [vmem:[#allocation6_spill] sm:$0xff] }
 0x688   :  { %v667_v7 = vsel %vm268_vm2, %v661_v4, %v659_v11 }
 0x689   :  { %734 = vmatprep.mubr.f32.mxu1 %v667_v7 }
 0x68a   :  { %735 = vmatmul.mubr.f32.vlgmr.msra.gmra.mxu1 %v666_v15  ;;  %v3484_v15 = vld [vmem:[#allocation9_spill] sm:$0xff] }
 0x68b   :  { %979 = vmatpush1.msra.mxu1 %v2592_v13  ;;  %1014 = vmatprep.mubr.f32.mxu1 %v3477_v10 }
 0x68c   :  { %980 = vmatprep.subr.mxu1 %v2597_v14 }
 0x68d   :  { %981 = vmatpush1.msra.mxu1 %v2609_v17 }
 0x68e   :  { %2233 = vmatprep.subr.mxu1 %v2623_v20 }
 0x74a   :  { %v2192_v55 = vpop.f32.mrf.mxu1 }
 0x74c   :  { %v2193_v56 = vpop.f32.mrf.mxu1 }
 0x74d   :  { %v2194_v23 = vadd.f32 %v2193_v56, %v2192_v55 }
 0x74f   :  { %v737_v22 = vadd.f32 1e-07, %v2194_v23 }
 0x751   :  { %2438 = vrsqrt.f32 %v737_v22  ;;  %v3486_v22 = vld [vmem:[#allocation5_spill] sm:$0xff] }
 0x75e   :  { %v2439_v4 = vpop.eup %2438 }
 0x75f   :  { %2077 = vmatmul.mubr.msk.f32.vlgmr.msra.gmra.mxu0 %vm140_vm0, %v2439_v4 }
 0x760   :  { %2196 = vmatpush3.msra.mxu0 %v2630_v24 }
 0x761   :  { %2197 = vmatprep.subr.mxu0 %v2635_v25 }
 0x762   :  { %2198 = vmatpush3.msra.mxu0 %v2641_v26 }
 0x763   :  { %2199 = vmatprep.subr.mxu0 %v2648_v27 }
 0x764   :  { %2200 = vmatpush3.msra.mxu0 %v2654_v28 }
 0x765   :  { %2201 = vmatprep.subr.mxu0 %v2660_v29 }
 0x766   :  { %2202 = vmatpush3.msra.mxu0 %v2669_v30 }
 0x767   :  { %2203 = vmatprep.subr.mxu0 %v2675_v31 }
 0x768   :  { %2204 = vmatpush3.msra.mxu0 %v2681_v32 }
 0x769   :  { %2205 = vmatprep.subr.mxu0 %v2687_v33 }
 0x76a   :  { %2206 = vmatpush3.msra.mxu0 %v2693_v34 }
 0x76b   :  { %2207 = vmatprep.subr.mxu0 %v2699_v35 }
 0x76c   :  { %2208 = vmatpush3.msra.mxu0 %v2705_v36 }
 0x76d   :  { %2209 = vmatprep.subr.mxu0 %v2711_v37 }
 0x76e   :  { %2210 = vmatpush3.msra.mxu0 %v2717_v38 }
 0x76f   :  { %2211 = vmatprep.subr.mxu0 %v2723_v39 }
 0x770   :  { %2212 = vmatpush3.msra.mxu0 %v2729_v40 }
 0x771   :  { %2213 = vmatprep.subr.mxu0 %v2735_v41 }
 0x772   :  { %2214 = vmatpush3.msra.mxu0 %v2741_v42 }
 0x773   :  { %2215 = vmatprep.subr.mxu0 %v2747_v43 }
 0x774   :  { %2216 = vmatpush3.msra.mxu0 %v2753_v44 }
 0x775   :  { %2217 = vmatprep.subr.mxu0 %v2759_v45 }
 0x776   :  { %2218 = vmatpush3.msra.mxu0 %v2765_v46 }
 0x777   :  { %2219 = vmatprep.subr.mxu0 %v2771_v47 }
 0x778   :  { %2220 = vmatpush3.msra.mxu0 %v2777_v48 }
 0x779   :  { %2221 = vmatprep.subr.mxu0 %v2783_v49 }
 0x77a   :  { %2222 = vmatpush3.msra.mxu0 %v2789_v50 }
 0x77b   :  { %2223 = vmatprep.subr.mxu0 %v2794_v51 }
 0x77c   :  { %2224 = vmatpush3.msra.mxu0 %v2799_v52 }
 0x77d   :  { %2225 = vmatprep.subr.mxu0 %v2805_v53 }
 0x77e   :  { %2226 = vmatpush3.msra.mxu0 %v2811_v54 }
 0x77f   :  { %1169 = vmatprep.subr.mxu0 %v2587_v12 }
 0x81f   :  { %v810_v58 = vpop.f32.mrf.mxu0 }
 0x820   :  { %v817_v2 = vrot.slane %v810_v58, 1  ;;  %v823_v16 = vmul.f32 %v810_v58, %v639_v3 }
 0x821   :  { %v812_v0 = vpop.f32.mrf.mxu0 }
 0x822   :  { %v818_v18 = vrot.slane %v812_v0, 1  ;;  %v824_v5 = vmul.f32 %v812_v0, %v645_v6  ;;  %v825_v19 = vmul.f32 %v817_v2, %v651_v59  ;;  %v830_v57 = vrot.slane %v823_v16, %v3481_v21  ;;  %v3485_v59 = vld [vmem:[#allocation8_spill] sm:$0xff] }
 0x824   :  { %v826_v60 = vmul.f32 %v818_v18, %v657_v8  ;;  %v834_v61 = vrot.slane %v824_v5, %v3481_v21  ;;  %v838_v11 = vrot.slane %v825_v19, %v3481_v21  ;;  %v843_v7 = vmul.f32 %v830_v57, %v3483_v9 }
 0x826   :  { %v842_v62 = vrot.slane %v826_v60, %v3481_v21  ;;  %v844_v1 = vmul.f32 %v834_v61, %v3482_v63  ;;  %v845_v6 = vmul.f32 %v838_v11, %v3485_v59 }
 0x828   :  { %911 = vmatprep.mubr.f32.mxu0 %v844_v1  ;;  %v846_v3 = vmul.f32 %v842_v62, %v3484_v15 }
 0x829   :  { %912 = vmatmul.mubr.f32.vlgmr.msra.gmra.mxu0 %v843_v7 }
 0x82a   :  { %916 = vmatprep.mubr.f32.mxu0 %v846_v3  ;;  %1170 = vmatpush1.msra.mxu0 %v2592_v13 }
 0x82b   :  { %1171 = vmatprep.subr.mxu0 %v2597_v14 }
 0x82c   :  { %1172 = vmatpush1.msra.mxu0 %v2609_v17 }
 0x82d   :  { %917 = vmatmul.mubr.f32.gmra.mxu0 %v845_v6  ;;  %2268 = vmatprep.subr.mxu0 %v2623_v20 }
 0x82e   :  { %1205 = vmatprep.mubr.f32.mxu0 %v3477_v10 }
 0x8e9   :  { %v2227_v8 = vpop.f32.mrf.mxu0 }
 0x8eb   :  { %v2228_v55 = vpop.f32.mrf.mxu0 }
 0x8ec   :  { %v2229_v56 = vadd.f32 %v2228_v55, %v2227_v8 }
 0x8ed   :  { %v2230_v23 = vpop.f32.mrf.mxu0 }
 0x8ee   :  { %v914_v4 = vadd.f32 %v2229_v56, %v3486_v22 }
 0x8ef   :  { %v2231_v58 = vpop.f32.mrf.mxu0 }
 0x8f0   :  { %v2232_v2 = vadd.f32 %v2231_v58, %v2230_v23  ;;  %v922_v16 = vsel %vm140_vm0, %v914_v4, -inf }
 0x8f1   :  { %923 = vmax.xlane.f32.xlu0 %v922_v16 }
 0x8f2   :  { %v919_v0 = vadd.f32 %v2232_v2, %v3486_v22 }
 0x8f4   :  { %v925_v18 = vsel %vm140_vm0, %v919_v0, -inf }
 0x8f5   :  { %926 = vmax.xlane.f32.xlu1 %v925_v18 }
 0x97a   :  { %v924_v5 = vpop.xlane.xlu0 %923 }
 0x97b   :  { %v928_v19 = vsub.f32 %v914_v4, %v924_v5 }
 0x97d   :  { %v930_v57 = vmul.f32 1.442695, %v928_v19 }
 0x97e   :  { %v927_v60 = vpop.xlane.xlu1 %926 }
 0x97f   :  { %2440 = vpow2.f32 %v930_v57  ;;  %v929_v61 = vsub.f32 %v919_v0, %v927_v60 }
 0x981   :  { %v932_v62 = vmul.f32 1.442695, %v929_v61 }
 0x983   :  { %2442 = vpow2.f32 %v932_v62 }
 0x98c   :  { %v2441_v1 = vpop.eup %2440 }
 0x98d   :  { %v934_v11 = vsel %vm140_vm0, %v2441_v1, 0.0 }
 0x98e   :  { %935 = vadd.xlane.f32.xlu0 %v934_v11 }
 0x990   :  { %v2443_v7 = vpop.eup %2442 }
 0x991   :  { %v937_v3 = vsel %vm140_vm0, %v2443_v7, 0.0 }
 0x992   :  { %938 = vadd.xlane.f32.xlu1 %v937_v3 }
 0xa17   :  { %v936_v6 = vpop.xlane.xlu0 %935 }
 0xa18   :  { %2444 = vrcp.f32 %v936_v6 }
 0xa1b   :  { %v939_v8 = vpop.xlane.xlu1 %938 }
 0xa1c   :  { %2446 = vrcp.f32 %v939_v8 }
 0xa25   :  { %v2445_v55 = vpop.eup %2444 }
 0xa26   :  { %v942_v56 = vmul.f32 %v2445_v55, %v2441_v1 }
 0xa28   :  { %2078 = vmatmul.mubr.msk.f32.vlgmr.msra.gmra.mxu1 %vm140_vm0, %v942_v56 }
 0xa29   :  { %v2447_v23 = vpop.eup %2446  ;;  %1020 = vmatprep.mubr.f32.mxu1 %v3477_v10  ;;  %2234 = vmatpush3.msra.mxu1 %v2630_v24 }
 0xa2a   :  { %v943_v22 = vmul.f32 %v2447_v23, %v2443_v7  ;;  %2235 = vmatprep.subr.mxu1 %v2635_v25 }
 0xa2b   :  { %2236 = vmatpush3.msra.mxu1 %v2641_v26 }
 0xa2c   :  { %2079 = vmatmul.mubr.msk.f32.gmra.mxu1 %vm140_vm0, %v943_v22  ;;  %2237 = vmatprep.subr.mxu1 %v2648_v27 }
 0xa2d   :  { %2238 = vmatpush3.msra.mxu1 %v2654_v28 }
 0xa2e   :  { %2239 = vmatprep.subr.mxu1 %v2660_v29 }
 0xa2f   :  { %2240 = vmatpush3.msra.mxu1 %v2669_v30 }
 0xa30   :  { %2241 = vmatprep.subr.mxu1 %v2675_v31 }
 0xa31   :  { %2242 = vmatpush3.msra.mxu1 %v2681_v32 }
 0xa32   :  { %2243 = vmatprep.subr.mxu1 %v2687_v33 }
 0xa33   :  { %2244 = vmatpush3.msra.mxu1 %v2693_v34 }
 0xa34   :  { %2245 = vmatprep.subr.mxu1 %v2699_v35 }
 0xa35   :  { %2246 = vmatpush3.msra.mxu1 %v2705_v36 }
 0xa36   :  { %2247 = vmatprep.subr.mxu1 %v2711_v37 }
 0xa37   :  { %2248 = vmatpush3.msra.mxu1 %v2717_v38 }
 0xa38   :  { %2249 = vmatprep.subr.mxu1 %v2723_v39 }
 0xa39   :  { %2250 = vmatpush3.msra.mxu1 %v2729_v40 }
 0xa3a   :  { %2251 = vmatprep.subr.mxu1 %v2735_v41 }
 0xa3b   :  { %2252 = vmatpush3.msra.mxu1 %v2741_v42 }
 0xa3c   :  { %2253 = vmatprep.subr.mxu1 %v2747_v43 }
 0xa3d   :  { %2254 = vmatpush3.msra.mxu1 %v2753_v44 }
 0xa3e   :  { %2255 = vmatprep.subr.mxu1 %v2759_v45 }
 0xa3f   :  { %2256 = vmatpush3.msra.mxu1 %v2765_v46 }
 0xa40   :  { %2257 = vmatprep.subr.mxu1 %v2771_v47 }
 0xa41   :  { %2258 = vmatpush3.msra.mxu1 %v2777_v48 }
 0xa42   :  { %2259 = vmatprep.subr.mxu1 %v2783_v49 }
 0xa43   :  { %2260 = vmatpush3.msra.mxu1 %v2789_v50 }
 0xa44   :  { %2261 = vmatprep.subr.mxu1 %v2794_v51 }
 0xa45   :  { %2262 = vmatpush3.msra.mxu1 %v2799_v52 }
 0xa46   :  { %2263 = vmatprep.subr.mxu1 %v2805_v53 }
 0xa47   :  { %2264 = vmatpush3.msra.mxu1 %v2811_v54 }
 0xa48   :  { %1375 = vmatprep.subr.mxu1 %v2587_v12 }
 0xae8   :  { %v1016_v4 = vpop.f32.mrf.mxu1 }
 0xae9   :  { %v1027_v58 = vmul.f32 %v1016_v4, %v3483_v9 }
 0xaea   :  { %v1018_v2 = vpop.f32.mrf.mxu1 }
 0xaeb   :  { %v1031_v16 = vrot.slane %v1027_v58, 4  ;;  %v1028_v0 = vmul.f32 %v1018_v2, %v3482_v63 }
 0xaec   :  { %v1022_v18 = vpop.f32.mrf.mxu1 }
 0xaed   :  { %v1032_v5 = vadd.f32 %v1031_v16, %v1027_v58  ;;  %v1037_v19 = vrot.slane %v1028_v0, 4  ;;  %v1029_v57 = vmul.f32 %v1022_v18, %v3485_v59 }
 0xaee   :  { %v1024_v60 = vpop.f32.mrf.mxu1 }
 0xaef   :  { %v1033_v61 = vrot.slane %v1032_v5, 2  ;;  %v1038_v62 = vadd.f32 %v1037_v19, %v1028_v0  ;;  %v1043_v1 = vrot.slane %v1029_v57, 4  ;;  %v1030_v11 = vmul.f32 %v1024_v60, %v3484_v15 }
 0xaf1   :  { %v1039_v7 = vrot.slane %v1038_v62, 2  ;;  %v1044_v12 = vadd.f32 %v1043_v1, %v1029_v57  ;;  %v1049_v3 = vrot.slane %v1030_v11, 4  ;;  %v1034_v6 = vadd.f32 %v1033_v61, %v1032_v5 }
 0xaf3   :  { %v1040_v8 = vadd.f32 %v1039_v7, %v1038_v62  ;;  %v1045_v55 = vrot.slane %v1044_v12, 2  ;;  %v1050_v56 = vadd.f32 %v1049_v3, %v1030_v11  ;;  %v1035_v58 = vrot.slane %v1034_v6, 1 }
 0xaf5   :  { %v1041_v23 = vrot.slane %v1040_v8, 1  ;;  %v1046_v22 = vadd.f32 %v1045_v55, %v1044_v12  ;;  %v1051_v4 = vrot.slane %v1050_v56, 2  ;;  %v1036_v19 = vadd.f32 %v1035_v58, %v1034_v6 }
 0xaf7   :  { %v1047_v2 = vrot.slane %v1046_v22, 1  ;;  %v1052_v16 = vadd.f32 %v1051_v4, %v1050_v56  ;;  %v3045_v18 = vadd.f32 %v1041_v23, %v1040_v8  ;;  %v1055_v62 = vmul.f32 %v1036_v19, %v1036_v19 }
 0xaf9   :  { %v3047_v59 = vadd.f32 %v1047_v2, %v1046_v22  ;;  %v1053_v0 = vrot.slane %v1052_v16, 1  ;;  %v1056_v5 = vmul.f32 %v3045_v18, %v3045_v18 }
 0xafb   :  { %v1054_v60 = vadd.f32 %v1053_v0, %v1052_v16  ;;  %v1057_v57 = vmul.f32 %v3047_v59, %v3047_v59 }
 0xafd   :  { %v1058_v61 = vmul.f32 %v1054_v60, %v1054_v60  ;;  %v1063_v11 = vsel %vm268_vm2, %v1057_v57, %v1055_v62  ;;  %v3149_v57 = vld [vmem:[%s3445_s3 + $0x78] sm:$0xff]  ;;  %v3161_v62 = vld [vmem:[%s3445_s3 + $0x70] sm:$0xff] }
 0xaff   :  { %v1064_v1 = vsel %vm268_vm2, %v1058_v61, %v1056_v5  ;;  %v3155_v61 = vld [vmem:[%s3445_s3 + $0xf0] sm:$0xff] }
 0xb00   :  { %1131 = vmatprep.mubr.f32.mxu1 %v1064_v1  ;;  %v3168_v1 = vld [vmem:[%s3445_s3 + $0xe8] sm:$0xff] }
 0xb01   :  { %1132 = vmatmul.mubr.f32.vlgmr.msra.gmra.mxu1 %v1063_v11  ;;  %v3174_v11 = vld [vmem:[%s3445_s3 + $0x68] sm:$0xff] }
 0xb02   :  { %1376 = vmatpush1.msra.mxu1 %v2592_v13  ;;  %1411 = vmatprep.mubr.f32.mxu1 %v3477_v10  ;;  %v3095_v13 = vld [vmem:[%s3444_s2 + $0x18] sm:$0xff] }
 0xb03   :  { %1377 = vmatprep.subr.mxu1 %v2597_v14 }
 0xb04   :  { %1378 = vmatpush1.msra.mxu1 %v2609_v17 }
 0xb05   :  { %2306 = vmatprep.subr.mxu1 %v2623_v20 }
 0xbc1   :  { %v2265_v7 = vpop.f32.mrf.mxu1 }
 0xbc3   :  { %v2266_v12 = vpop.f32.mrf.mxu1 }
 0xbc4   :  { %v2267_v3 = vadd.f32 %v2266_v12, %v2265_v7  ;;  %v3180_v7 = vld [vmem:[%s3445_s3 + $0xe0] sm:$0xff] }
 0xbc5   :  { %v3186_v12 = vld [vmem:[%s3445_s3 + $0x60] sm:$0xff] }
 0xbc6   :  { %v1134_v6 = vadd.f32 1e-07, %v2267_v3  ;;  %v3192_v3 = vld [vmem:[%s3445_s3 + $0xd8] sm:$0xff] }
 0xbc8   :  { %2448 = vrsqrt.f32 %v1134_v6  ;;  %v3198_v6 = vld [vmem:[%s3445_s3 + $0x58] sm:$0xff] }
 0xbd5   :  { %v2449_v8 = vpop.eup %2448 }
 0xbd6   :  { %2080 = vmatmul.mubr.msk.f32.vlgmr.msra.gmra.mxu0 %vm140_vm0, %v2449_v8  ;;  %v3204_v8 = vld [vmem:[%s3445_s3 + $0xd0] sm:$0xff] }
 0xbd7   :  { %2269 = vmatpush3.msra.mxu0 %v2630_v24 }
 0xbd8   :  { %2270 = vmatprep.subr.mxu0 %v2635_v25 }
 0xbd9   :  { %2271 = vmatpush3.msra.mxu0 %v2641_v26 }
 0xbda   :  { %2272 = vmatprep.subr.mxu0 %v2648_v27 }
 0xbdb   :  { %2273 = vmatpush3.msra.mxu0 %v2654_v28 }
 0xbdc   :  { %2274 = vmatprep.subr.mxu0 %v2660_v29 }
 0xbdd   :  { %2275 = vmatpush3.msra.mxu0 %v2669_v30 }
 0xbde   :  { %2276 = vmatprep.subr.mxu0 %v2675_v31 }
 0xbdf   :  { %2277 = vmatpush3.msra.mxu0 %v2681_v32 }
 0xbe0   :  { %2278 = vmatprep.subr.mxu0 %v2687_v33 }
 0xbe1   :  { %2279 = vmatpush3.msra.mxu0 %v2693_v34 }
 0xbe2   :  { %2280 = vmatprep.subr.mxu0 %v2699_v35 }
 0xbe3   :  { %2281 = vmatpush3.msra.mxu0 %v2705_v36  ;;  %v3110_v36 = vld [vmem:[%s3444_s2 + $0x10] sm:$0xff] }
 0xbe4   :  { %2282 = vmatprep.subr.mxu0 %v2711_v37  ;;  %v3487_v37 = vld [vmem:[#allocation8_spill] sm:$0xff] }
 0xbe5   :  { %2283 = vmatpush3.msra.mxu0 %v2717_v38 }
 0xbe6   :  { %2284 = vmatprep.subr.mxu0 %v2723_v39  ;;  %v3117_v39 = vld [vmem:[%s3444_s2 + $0x8] sm:$0xff] }
 0xbe7   :  { %2285 = vmatpush3.msra.mxu0 %v2729_v40  ;;  %v3123_v40 = vld [vmem:[%s3444_s2] sm:$0xff] }
 0xbe8   :  { %2286 = vmatprep.subr.mxu0 %v2735_v41  ;;  %v3129_v41 = vld [vmem:[%s3445_s3 + $0xf8] sm:$0xff] }
 0xbe9   :  { %2287 = vmatpush3.msra.mxu0 %v2741_v42 }
 0xbea   :  { %2288 = vmatprep.subr.mxu0 %v2747_v43 }
 0xbeb   :  { %2289 = vmatpush3.msra.mxu0 %v2753_v44 }
 0xbec   :  { %2290 = vmatprep.subr.mxu0 %v2759_v45 }
 0xbed   :  { %2291 = vmatpush3.msra.mxu0 %v2765_v46  ;;  %v3136_v46 = vld [vmem:[%s3446_s4] ss:$0 sm:$0xff] }
 0xbee   :  { %2292 = vmatprep.subr.mxu0 %v2771_v47  ;;  %3488 = vst [vmem:[#allocation5_spill] sm:$0xff] %v3136_v46 }
 0xbef   :  { %2293 = vmatpush3.msra.mxu0 %v2777_v48 }
 0xbf0   :  { %2294 = vmatprep.subr.mxu0 %v2783_v49 }
 0xbf1   :  { %2295 = vmatpush3.msra.mxu0 %v2789_v50 }
 0xbf2   :  { %2296 = vmatprep.subr.mxu0 %v2794_v51 }
 0xbf3   :  { %2297 = vmatpush3.msra.mxu0 %v2799_v52 }
 0xbf4   :  { %2298 = vmatprep.subr.mxu0 %v2805_v53 }
 0xbf5   :  { %2299 = vmatpush3.msra.mxu0 %v2811_v54 }
 0xbf6   :  { %1566 = vmatprep.subr.mxu0 %v3095_v13 }
 0xc96   :  { %v1207_v14 = vpop.f32.mrf.mxu0 }
 0xc97   :  { %v1214_v17 = vrot.slane %v1207_v14, 1  ;;  %v1220_v20 = vmul.f32 %v1207_v14, %v1036_v19  ;;  %v3210_v14 = vld [vmem:[%s3445_s3 + $0x50] sm:$0xff] }
 0xc98   :  { %v1209_v24 = vpop.f32.mrf.mxu0 }
 0xc99   :  { %v1215_v25 = vrot.slane %v1209_v24, 1  ;;  %v1221_v26 = vmul.f32 %v1209_v24, %v3045_v18  ;;  %v1222_v27 = vmul.f32 %v1214_v17, %v3047_v59  ;;  %v1227_v28 = vrot.slane %v1220_v20, %v3481_v21  ;;  %v3216_v17 = vld [vmem:[%s3445_s3 + $0xc8] sm:$0xff]  ;;  %v3228_v24 = vld [vmem:[%s3445_s3 + $0xc0] sm:$0xff] }
 0xc9a   :  { %v3222_v20 = vld [vmem:[%s3445_s3 + $0x48] sm:$0xff] }
 0xc9b   :  { %v1223_v29 = vmul.f32 %v1215_v25, %v1054_v60  ;;  %v1231_v30 = vrot.slane %v1221_v26, %v3481_v21  ;;  %v1235_v33 = vrot.slane %v1222_v27, %v3481_v21  ;;  %v1240_v34 = vmul.f32 %v1227_v28, %v3483_v9  ;;  %v3234_v25 = vld [vmem:[%s3445_s3 + $0x40] sm:$0xff]  ;;  %v3240_v26 = vld [vmem:[%s3445_s3 + $0xb8] sm:$0xff]  ;;  %v3252_v28 = vld [vmem:[%s3445_s3 + $0xb0] sm:$0xff] }
 0xc9c   :  { %v3246_v27 = vld [vmem:[%s3445_s3 + $0x38] sm:$0xff] }
 0xc9d   :  { %v1239_v31 = vrot.slane %v1223_v29, %v3481_v21  ;;  %v1241_v32 = vmul.f32 %v1231_v30, %v3482_v63  ;;  %v1242_v38 = vmul.f32 %v1235_v33, %v3487_v37  ;;  %v3258_v29 = vld [vmem:[%s3445_s3 + $0x30] sm:$0xff]  ;;  %v3264_v30 = vld [vmem:[%s3445_s3 + $0xa8] sm:$0xff]  ;;  %v3282_v33 = vld [vmem:[%s3445_s3 + $0x20] sm:$0xff] }
 0xc9f   :  { %1308 = vmatprep.mubr.f32.mxu0 %v1241_v32  ;;  %v1243_v35 = vmul.f32 %v1239_v31, %v3484_v15  ;;  %v3270_v31 = vld [vmem:[%s3445_s3 + $0x28] sm:$0xff]  ;;  %v3276_v32 = vld [vmem:[%s3445_s3 + $0xa0] sm:$0xff] }
 0xca0   :  { %1309 = vmatmul.mubr.f32.vlgmr.msra.gmra.mxu0 %v1240_v34  ;;  %v3288_v34 = vld [vmem:[%s3445_s3 + $0x98] sm:$0xff] }
 0xca1   :  { %1313 = vmatprep.mubr.f32.mxu0 %v1243_v35  ;;  %1567 = vmatpush1.msra.mxu0 %v3110_v36  ;;  %v3294_v35 = vld [vmem:[%s3445_s3 + $0x18] sm:$0xff] }
 0xca2   :  { %1568 = vmatprep.subr.mxu0 %v3117_v39 }
 0xca3   :  { %1569 = vmatpush1.msra.mxu0 %v3123_v40 }
 0xca4   :  { %1314 = vmatmul.mubr.f32.gmra.mxu0 %v1242_v38  ;;  %2341 = vmatprep.subr.mxu0 %v3129_v41  ;;  %v3300_v38 = vld [vmem:[%s3445_s3 + $0x90] sm:$0xff] }
 0xca5   :  { %1602 = vmatprep.mubr.f32.mxu0 %v3477_v10 }
 0xd60   :  { %v2300_v42 = vpop.f32.mrf.mxu0 }
 0xd62   :  { %v2301_v43 = vpop.f32.mrf.mxu0 }
 0xd63   :  { %v2302_v44 = vadd.f32 %v2301_v43, %v2300_v42  ;;  %v3306_v42 = vld [vmem:[%s3445_s3 + $0x10] sm:$0xff]  ;;  %v3312_v43 = vld [vmem:[%s3445_s3 + $0x88] sm:$0xff] }
 0xd64   :  { %v2303_v45 = vpop.f32.mrf.mxu0 }
 0xd65   :  { %v1311_v47 = vadd.f32 %v3136_v46, %v2302_v44  ;;  %v3318_v44 = vld [vmem:[%s3445_s3 + $0x8] sm:$0xff] }
 0xd66   :  { %v2304_v48 = vpop.f32.mrf.mxu0 }
 0xd67   :  { %v2305_v49 = vadd.f32 %v2304_v48, %v2303_v45  ;;  %v1319_v50 = vsel %vm140_vm0, %v1311_v47, -inf  ;;  %v3324_v45 = vld [vmem:[%s3445_s3 + $0x80] sm:$0xff] }
 0xd68   :  { %1320 = vmax.xlane.f32.xlu0 %v1319_v50 }
 0xd69   :  { %v1316_v51 = vadd.f32 %v3136_v46, %v2305_v49 }
 0xd6b   :  { %v1322_v52 = vsel %vm140_vm0, %v1316_v51, -inf }
 0xd6c   :  { %1323 = vmax.xlane.f32.xlu1 %v1322_v52 }
 0xdf1   :  { %v1321_v53 = vpop.xlane.xlu0 %1320 }
 0xdf2   :  { %v1325_v54 = vsub.f32 %v1311_v47, %v1321_v53  ;;  %v3330_v47 = vld [vmem:[%s3445_s3] sm:$0xff]  ;;  %s2532_s3 = smov [#allocation2]  }
 0xdf3   :  { %s2058_s11 = sshll.u32 %s2532_s3, 4  ;;  %s2059_s11 = int_to_ptr.vmem [resolvable:$true] %s2058_s11 }
 0xdf4   :  { %v1327_v59 = vmul.f32 1.442695, %v1325_v54  ;;  %s2507_s12 = scalar_lea.vmem %s2059_s11, 64  ;;  %p2512_p1 = scmp.lt.s32.totalorder %s2059_s11, %s2059_s11 }
 0xdf5   :  { %v1324_v55 = vpop.xlane.xlu1 %1323  ;;  %p2508_p0 = scmp.ne.s32.totalorder %s2059_s11, %s2507_s12  ;;  %p2513_p2 = scmp.lt.s32.totalorder %s2507_s12, %s2507_s12 }
 0xdf6   :  { %2450 = vpow2.f32 %v1327_v59  ;;  %v1326_v56 = vsub.f32 %v1316_v51, %v1324_v55 }
 0xdf7   :  { %p2514_p3 = por %p2513_p2, %p2512_p1 }
 0xdf8   :  { %v1329_v23 = vmul.f32 1.442695, %v1326_v56 }
 0xdf9   :  { %p2515_p4 = pnand %p2514_p3, %p2508_p0 }
 0xdfa   :  { %2452 = vpow2.f32 %v1329_v23 }
 0xe03   :  { %v2451_v22 = vpop.eup %2450 }
 0xe04   :  { %v1331_v4 = vsel %vm140_vm0, %v2451_v22, 0.0 }
 0xe05   :  { %1332 = vadd.xlane.f32.xlu0 %v1331_v4 }
 0xe07   :  { %v2453_v58 = vpop.eup %2452 }
 0xe08   :  { %v1334_v2 = vsel %vm140_vm0, %v2453_v58, 0.0 }
 0xe09   :  { %1335 = vadd.xlane.f32.xlu1 %v1334_v2 }
 0xe8e   :  { %v1333_v16 = vpop.xlane.xlu0 %1332 }
 0xe8f   :  { %2454 = vrcp.f32 %v1333_v16 }
 0xe92   :  { %v1336_v18 = vpop.xlane.xlu1 %1335 }
 0xe93   :  { %2456 = vrcp.f32 %v1336_v18 }
 0xe9c   :  { %v2455_v0 = vpop.eup %2454 }
 0xe9d   :  { %v1339_v19 = vmul.f32 %v2455_v0, %v2451_v22 }
 0xe9f   :  { %2081 = vmatmul.mubr.msk.f32.vlgmr.msra.gmra.mxu1 %vm140_vm0, %v1339_v19 }
 0xea0   :  { %v2457_v60 = vpop.eup %2456  ;;  %1417 = vmatprep.mubr.f32.mxu1 %v3477_v10  ;;  %2307 = vmatpush3.msra.mxu1 %v3149_v57 }
 0xea1   :  { %v1340_v5 = vmul.f32 %v2457_v60, %v2453_v58  ;;  %2308 = vmatprep.subr.mxu1 %v3155_v61 }
 0xea2   :  { %2309 = vmatpush3.msra.mxu1 %v3161_v62 }
 0xea3   :  { %2082 = vmatmul.mubr.msk.f32.gmra.mxu1 %vm140_vm0, %v1340_v5  ;;  %2310 = vmatprep.subr.mxu1 %v3168_v1 }
 0xea4   :  { %2311 = vmatpush3.msra.mxu1 %v3174_v11 }
 0xea5   :  { %2312 = vmatprep.subr.mxu1 %v3180_v7 }
 0xea6   :  { %2313 = vmatpush3.msra.mxu1 %v3186_v12 }
 0xea7   :  { %2314 = vmatprep.subr.mxu1 %v3192_v3 }
 0xea8   :  { %2315 = vmatpush3.msra.mxu1 %v3198_v6 }
 0xea9   :  { %2316 = vmatprep.subr.mxu1 %v3204_v8 }
 0xeaa   :  { %2317 = vmatpush3.msra.mxu1 %v3210_v14 }
 0xeab   :  { %2318 = vmatprep.subr.mxu1 %v3216_v17 }
 0xeac   :  { %2319 = vmatpush3.msra.mxu1 %v3222_v20 }
 0xead   :  { %2320 = vmatprep.subr.mxu1 %v3228_v24 }
 0xeae   :  { %2321 = vmatpush3.msra.mxu1 %v3234_v25 }
 0xeaf   :  { %2322 = vmatprep.subr.mxu1 %v3240_v26 }
 0xeb0   :  { %2323 = vmatpush3.msra.mxu1 %v3246_v27 }
 0xeb1   :  { %2324 = vmatprep.subr.mxu1 %v3252_v28 }
 0xeb2   :  { %2325 = vmatpush3.msra.mxu1 %v3258_v29 }
 0xeb3   :  { %2326 = vmatprep.subr.mxu1 %v3264_v30 }
 0xeb4   :  { %2327 = vmatpush3.msra.mxu1 %v3270_v31 }
 0xeb5   :  { %2328 = vmatprep.subr.mxu1 %v3276_v32 }
 0xeb6   :  { %2329 = vmatpush3.msra.mxu1 %v3282_v33 }
 0xeb7   :  { %2330 = vmatprep.subr.mxu1 %v3288_v34 }
 0xeb8   :  { %2331 = vmatpush3.msra.mxu1 %v3294_v35 }
 0xeb9   :  { %2332 = vmatprep.subr.mxu1 %v3300_v38 }
 0xeba   :  { %2333 = vmatpush3.msra.mxu1 %v3306_v42 }
 0xebb   :  { %2334 = vmatprep.subr.mxu1 %v3312_v43 }
 0xebc   :  { %2335 = vmatpush3.msra.mxu1 %v3318_v44 }
 0xebd   :  { %2336 = vmatprep.subr.mxu1 %v3324_v45 }
 0xebe   :  { %2337 = vmatpush3.msra.mxu1 %v3330_v47 }
 0xebf   :  { %1772 = vmatprep.subr.mxu1 %v3095_v13 }
 0xf5f   :  { %v1413_v48 = vpop.f32.mrf.mxu1 }
 0xf60   :  { %v1424_v49 = vmul.f32 %v1413_v48, %v3483_v9 }
 0xf61   :  { %v1415_v50 = vpop.f32.mrf.mxu1 }
 0xf62   :  { %v1428_v51 = vrot.slane %v1424_v49, 4  ;;  %v1425_v52 = vmul.f32 %v1415_v50, %v3482_v63 }
 0xf63   :  { %v1419_v53 = vpop.f32.mrf.mxu1 }
 0xf64   :  { %v1429_v54 = vadd.f32 %v1428_v51, %v1424_v49  ;;  %v1434_v59 = vrot.slane %v1425_v52, 4  ;;  %v1426_v55 = vmul.f32 %v1419_v53, %v3487_v37 }
 0xf65   :  { %v1421_v56 = vpop.f32.mrf.mxu1 }
 0xf66   :  { %v1430_v23 = vrot.slane %v1429_v54, 2  ;;  %v1435_v22 = vadd.f32 %v1434_v59, %v1425_v52  ;;  %v1440_v4 = vrot.slane %v1426_v55, 4  ;;  %v1427_v58 = vmul.f32 %v1421_v56, %v3484_v15 }
 0xf68   :  { %v1436_v2 = vrot.slane %v1435_v22, 2  ;;  %v1441_v16 = vadd.f32 %v1440_v4, %v1426_v55  ;;  %v1446_v18 = vrot.slane %v1427_v58, 4  ;;  %v1431_v0 = vadd.f32 %v1430_v23, %v1429_v54 }
 0xf6a   :  { %v1437_v19 = vadd.f32 %v1436_v2, %v1435_v22  ;;  %v1442_v60 = vrot.slane %v1441_v16, 2  ;;  %v1447_v5 = vadd.f32 %v1446_v18, %v1427_v58  ;;  %v1432_v49 = vrot.slane %v1431_v0, 1 }
 0xf6c   :  { %v1438_v48 = vrot.slane %v1437_v19, 1  ;;  %v1443_v50 = vadd.f32 %v1442_v60, %v1441_v16  ;;  %v1448_v46 = vrot.slane %v1447_v5, 2  ;;  %v1433_v52 = vadd.f32 %v1432_v49, %v1431_v0  ;;  %v3489_v0 = vld [vmem:[#allocation11_spill] sm:$0xff] }
 0xf6e   :  { %v1444_v51 = vrot.slane %v1443_v50, 1  ;;  %v1449_v9 = vadd.f32 %v1448_v46, %v1447_v5  ;;  %v1439_v53 = vadd.f32 %v1438_v48, %v1437_v19  ;;  %v1452_v55 = vmul.f32 %v1433_v52, %v1433_v52 }
 0xf70   :  { %v1445_v37 = vadd.f32 %v1444_v51, %v1443_v50  ;;  %v1450_v63 = vrot.slane %v1449_v9, 1  ;;  %v1453_v56 = vmul.f32 %v1439_v53, %v1439_v53  ;;  %v3490_v50 = vld [vmem:[#allocation7_spill] sm:$0xff] }
 0xf72   :  { %v1451_v59 = vadd.f32 %v1450_v63, %v1449_v9  ;;  %v1454_v21 = vmul.f32 %v1445_v37, %v1445_v37 }
 0xf74   :  { %v1455_v15 = vmul.f32 %v1451_v59, %v1451_v59  ;;  %v1460_v23 = vsel %vm268_vm2, %v1454_v21, %v1452_v55  ;;  %v3492_v55 = vld [vmem:[#allocation9_spill] sm:$0xff] }
 0xf76   :  { %v1461_v54 = vsel %vm268_vm2, %v1455_v15, %v1453_v56  ;;  %v3491_v56 = vld [vmem:[#allocation6_spill] sm:$0xff] }
 0xf77   :  { %1528 = vmatprep.mubr.f32.mxu1 %v1461_v54 }
 0xf78   :  { %1529 = vmatmul.mubr.f32.vlgmr.msra.gmra.mxu1 %v1460_v23 }
 0xf79   :  { %1773 = vmatpush1.msra.mxu1 %v3110_v36  ;;  %1808 = vmatprep.mubr.f32.mxu1 %v3477_v10 }
 0xf7a   :  { %1774 = vmatprep.subr.mxu1 %v3117_v39 }
 0xf7b   :  { %1775 = vmatpush1.msra.mxu1 %v3123_v40 }
 0xf7c   :  { %2379 = vmatprep.subr.mxu1 %v3129_v41 }
0x1038   :  { %v2338_v63 = vpop.f32.mrf.mxu1 }
0x103a   :  { %v2339_v9 = vpop.f32.mrf.mxu1 }
0x103b   :  { %v2340_v46 = vadd.f32 %v2339_v9, %v2338_v63  ;;  %v3494_v9 = vld [vmem:[#allocation5_spill] sm:$0xff] }
0x103d   :  { %v1531_v22 = vadd.f32 1e-07, %v2340_v46 }
0x103f   :  { %2458 = vrsqrt.f32 %v1531_v22 }
0x104c   :  { %v2459_v15 = vpop.eup %2458 }
0x104d   :  { %2083 = vmatmul.mubr.msk.f32.vlgmr.msra.gmra.mxu0 %vm140_vm0, %v2459_v15 }
0x104e   :  { %2342 = vmatpush3.msra.mxu0 %v3149_v57 }
0x104f   :  { %2343 = vmatprep.subr.mxu0 %v3155_v61 }
0x1050   :  { %2344 = vmatpush3.msra.mxu0 %v3161_v62 }
0x1051   :  { %2345 = vmatprep.subr.mxu0 %v3168_v1 }
0x1052   :  { %2346 = vmatpush3.msra.mxu0 %v3174_v11 }
0x1053   :  { %2347 = vmatprep.subr.mxu0 %v3180_v7 }
0x1054   :  { %2348 = vmatpush3.msra.mxu0 %v3186_v12 }
0x1055   :  { %2349 = vmatprep.subr.mxu0 %v3192_v3 }
0x1056   :  { %2350 = vmatpush3.msra.mxu0 %v3198_v6 }
0x1057   :  { %2351 = vmatprep.subr.mxu0 %v3204_v8 }
0x1058   :  { %2352 = vmatpush3.msra.mxu0 %v3210_v14 }
0x1059   :  { %2353 = vmatprep.subr.mxu0 %v3216_v17 }
0x105a   :  { %2354 = vmatpush3.msra.mxu0 %v3222_v20 }
0x105b   :  { %2355 = vmatprep.subr.mxu0 %v3228_v24 }
0x105c   :  { %2356 = vmatpush3.msra.mxu0 %v3234_v25 }
0x105d   :  { %2357 = vmatprep.subr.mxu0 %v3240_v26 }
0x105e   :  { %2358 = vmatpush3.msra.mxu0 %v3246_v27 }
0x105f   :  { %2359 = vmatprep.subr.mxu0 %v3252_v28 }
0x1060   :  { %2360 = vmatpush3.msra.mxu0 %v3258_v29 }
0x1061   :  { %2361 = vmatprep.subr.mxu0 %v3264_v30 }
0x1062   :  { %2362 = vmatpush3.msra.mxu0 %v3270_v31 }
0x1063   :  { %2363 = vmatprep.subr.mxu0 %v3276_v32 }
0x1064   :  { %2364 = vmatpush3.msra.mxu0 %v3282_v33 }
0x1065   :  { %2365 = vmatprep.subr.mxu0 %v3288_v34 }
0x1066   :  { %2366 = vmatpush3.msra.mxu0 %v3294_v35 }
0x1067   :  { %2367 = vmatprep.subr.mxu0 %v3300_v38 }
0x1068   :  { %2368 = vmatpush3.msra.mxu0 %v3306_v42 }
0x1069   :  { %2369 = vmatprep.subr.mxu0 %v3312_v43 }
0x106a   :  { %2370 = vmatpush3.msra.mxu0 %v3318_v44 }
0x106b   :  { %2371 = vmatprep.subr.mxu0 %v3324_v45 }
0x106c   :  { %2372 = vmatpush3.msra.mxu0 %v3330_v47 }
0x106d   :  { %1963 = vmatprep.subr.mxu0 %v3095_v13 }
0x110d   :  { %v1604_v21 = vpop.f32.mrf.mxu0 }
0x110e   :  { %v1611_v41 = vrot.slane %v1604_v21, 1  ;;  %v1617_v4 = vmul.f32 %v1604_v21, %v1433_v52 }
0x110f   :  { %v1606_v58 = vpop.f32.mrf.mxu0 }
0x1110   :  { %v1612_v2 = vrot.slane %v1606_v58, 1  ;;  %v1618_v16 = vmul.f32 %v1606_v58, %v1439_v53  ;;  %v1619_v18 = vmul.f32 %v1611_v41, %v1445_v37  ;;  %v1624_v19 = vrot.slane %v1617_v4, %v3489_v0  ;;  %v3493_v37 = vld [vmem:[#allocation8_spill] sm:$0xff] }
0x1112   :  { %v1620_v60 = vmul.f32 %v1612_v2, %v1451_v59  ;;  %v1628_v5 = vrot.slane %v1618_v16, %v3489_v0  ;;  %v1632_v51 = vrot.slane %v1619_v18, %v3489_v0  ;;  %v1637_v13 = vmul.f32 %v1624_v19, %v3491_v56 }
0x1114   :  { %v1636_v48 = vrot.slane %v1620_v60, %v3489_v0  ;;  %v1638_v49 = vmul.f32 %v1628_v5, %v3490_v50  ;;  %v1639_v53 = vmul.f32 %v1632_v51, %v3493_v37 }
0x1116   :  { %1705 = vmatprep.mubr.f32.mxu0 %v1638_v49  ;;  %v1640_v52 = vmul.f32 %v1636_v48, %v3492_v55 }
0x1117   :  { %1706 = vmatmul.mubr.f32.vlgmr.msra.gmra.mxu0 %v1637_v13 }
0x1118   :  { %1710 = vmatprep.mubr.f32.mxu0 %v1640_v52  ;;  %1964 = vmatpush1.msra.mxu0 %v3110_v36 }
0x1119   :  { %1965 = vmatprep.subr.mxu0 %v3117_v39 }
0x111a   :  { %1966 = vmatpush1.msra.mxu0 %v3123_v40 }
0x111b   :  { %1711 = vmatmul.mubr.f32.gmra.mxu0 %v1639_v53 }
0x111c   :  { %1999 = vmatprep.mubr.f32.mxu0 %v3477_v10 }
0x11d7   :  { %v2373_v59 = vpop.f32.mrf.mxu0 }
0x11d9   :  { %v2374_v54 = vpop.f32.mrf.mxu0 }
0x11da   :  { %v2375_v23 = vadd.f32 %v2374_v54, %v2373_v59 }
0x11db   :  { %v2376_v63 = vpop.f32.mrf.mxu0 }
0x11dc   :  { %v1708_v46 = vadd.f32 %v3494_v9, %v2375_v23 }
0x11dd   :  { %v2377_v22 = vpop.f32.mrf.mxu0 }
0x11de   :  { %v2378_v15 = vadd.f32 %v2377_v22, %v2376_v63  ;;  %v1716_v21 = vsel %vm140_vm0, %v1708_v46, -inf  ;;  %v2531_v22 = vmov 1983009808  }
0x11df   :  { %1717 = vmax.xlane.f32.xlu0 %v1716_v21 }
0x11e0   :  { %v1713_v36 = vadd.f32 %v3494_v9, %v2378_v15  ;;  %v2024_v15 = vunpack.c.l.s4 %v2531_v22 }
0x11e2   :  { %v1719_v39 = vsel %vm140_vm0, %v1713_v36, -inf }
0x11e3   :  { %1720 = vmax.xlane.f32.xlu1 %v1719_v39 }
0x1268   :  { %v1718_v40 = vpop.xlane.xlu0 %1717 }
0x1269   :  { %v1722_v41 = vsub.f32 %v1708_v46, %v1718_v40 }
0x126b   :  { %v1724_v4 = vmul.f32 1.442695, %v1722_v41 }
0x126c   :  { %v1721_v58 = vpop.xlane.xlu1 %1720 }
0x126d   :  { %2460 = vpow2.f32 %v1724_v4  ;;  %v1723_v2 = vsub.f32 %v1713_v36, %v1721_v58  ;;  %v2025_v4 = vunpack.c.0.s8 %v2024_v15 }
0x126f   :  { %v1726_v16 = vmul.f32 1.442695, %v1723_v2 }
0x1271   :  { %2462 = vpow2.f32 %v1726_v16 }
0x127a   :  { %v2461_v18 = vpop.eup %2460 }
0x127b   :  { %v1728_v0 = vsel %vm140_vm0, %v2461_v18, 0.0 }
0x127c   :  { %1729 = vadd.xlane.f32.xlu0 %v1728_v0  ;;  %v3495_v0 = vld [vmem:[#allocation10_spill] sm:$0xff] }
0x127e   :  { %v2463_v19 = vpop.eup %2462 }
0x127f   :  { %v1731_v60 = vsel %vm140_vm0, %v2463_v19, 0.0 }
0x1280   :  { %1732 = vadd.xlane.f32.xlu1 %v1731_v60 }
0x1305   :  { %v1730_v5 = vpop.xlane.xlu0 %1729 }
0x1306   :  { %2464 = vrcp.f32 %v1730_v5 }
0x1309   :  { %v1733_v48 = vpop.xlane.xlu1 %1732 }
0x130a   :  { %2466 = vrcp.f32 %v1733_v48 }
0x1313   :  { %v2465_v49 = vpop.eup %2464 }
0x1314   :  { %v1736_v51 = vmul.f32 %v2465_v49, %v2461_v18 }
0x1316   :  { %2084 = vmatmul.mubr.msk.f32.vlgmr.msra.gmra.mxu1 %vm140_vm0, %v1736_v51 }
0x1317   :  { %v2467_v13 = vpop.eup %2466  ;;  %1814 = vmatprep.mubr.f32.mxu1 %v3477_v10  ;;  %2380 = vmatpush3.msra.mxu1 %v3149_v57 }
0x1318   :  { %v1737_v52 = vmul.f32 %v2467_v13, %v2463_v19  ;;  %2381 = vmatprep.subr.mxu1 %v3155_v61  ;;  %v2028_v19 = vsub.s32 %v2025_v4, %v3495_v0 }
0x1319   :  { %2382 = vmatpush3.msra.mxu1 %v3161_v62 }
0x131a   :  { %2085 = vmatmul.mubr.msk.f32.gmra.mxu1 %vm140_vm0, %v1737_v52  ;;  %2383 = vmatprep.subr.mxu1 %v3168_v1 }
0x131b   :  { %2384 = vmatpush3.msra.mxu1 %v3174_v11 }
0x131c   :  { %2385 = vmatprep.subr.mxu1 %v3180_v7 }
0x131d   :  { %2386 = vmatpush3.msra.mxu1 %v3186_v12 }
0x131e   :  { %2387 = vmatprep.subr.mxu1 %v3192_v3 }
0x131f   :  { %2388 = vmatpush3.msra.mxu1 %v3198_v6 }
0x1320   :  { %2389 = vmatprep.subr.mxu1 %v3204_v8 }
0x1321   :  { %2390 = vmatpush3.msra.mxu1 %v3210_v14 }
0x1322   :  { %2391 = vmatprep.subr.mxu1 %v3216_v17 }
0x1323   :  { %2392 = vmatpush3.msra.mxu1 %v3222_v20 }
0x1324   :  { %2393 = vmatprep.subr.mxu1 %v3228_v24 }
0x1325   :  { %2394 = vmatpush3.msra.mxu1 %v3234_v25 }
0x1326   :  { %2395 = vmatprep.subr.mxu1 %v3240_v26 }
0x1327   :  { %2396 = vmatpush3.msra.mxu1 %v3246_v27 }
0x1328   :  { %2397 = vmatprep.subr.mxu1 %v3252_v28 }
0x1329   :  { %2398 = vmatpush3.msra.mxu1 %v3258_v29 }
0x132a   :  { %2399 = vmatprep.subr.mxu1 %v3264_v30 }
0x132b   :  { %2400 = vmatpush3.msra.mxu1 %v3270_v31 }
0x132c   :  { %2401 = vmatprep.subr.mxu1 %v3276_v32 }
0x132d   :  { %2402 = vmatpush3.msra.mxu1 %v3282_v33 }
0x132e   :  { %2403 = vmatprep.subr.mxu1 %v3288_v34 }
0x132f   :  { %2404 = vmatpush3.msra.mxu1 %v3294_v35 }
0x1330   :  { %2405 = vmatprep.subr.mxu1 %v3300_v38 }
0x1331   :  { %2406 = vmatpush3.msra.mxu1 %v3306_v42 }
0x1332   :  { %2407 = vmatprep.subr.mxu1 %v3312_v43 }
0x1333   :  { %2408 = vmatpush3.msra.mxu1 %v3318_v44 }
0x1334   :  { %2409 = vmatprep.subr.mxu1 %v3324_v45 }
0x1335   :  { %2410 = vmatpush3.msra.mxu1 %v3330_v47 }
0x13d6   :  { %v1810_v10 = vpop.f32.mrf.mxu1 }
0x13d7   :  { %v1821_v57 = vmul.f32 %v1810_v10, %v3491_v56 }
0x13d8   :  { %v1812_v61 = vpop.f32.mrf.mxu1 }
0x13d9   :  { %v1825_v62 = vrot.slane %v1821_v57, 4  ;;  %v1822_v1 = vmul.f32 %v1812_v61, %v3490_v50 }
0x13da   :  { %v1816_v11 = vpop.f32.mrf.mxu1 }
0x13db   :  { %v1826_v7 = vadd.f32 %v1825_v62, %v1821_v57  ;;  %v1831_v12 = vrot.slane %v1822_v1, 4  ;;  %v1823_v3 = vmul.f32 %v1816_v11, %v3493_v37 }
0x13dc   :  { %v1818_v6 = vpop.f32.mrf.mxu1 }
0x13dd   :  { %v1827_v8 = vrot.slane %v1826_v7, 2  ;;  %v1832_v14 = vadd.f32 %v1831_v12, %v1822_v1  ;;  %v1837_v17 = vrot.slane %v1823_v3, 4  ;;  %v1824_v20 = vmul.f32 %v1818_v6, %v3492_v55 }
0x13df   :  { %v1833_v24 = vrot.slane %v1832_v14, 2  ;;  %v1838_v25 = vadd.f32 %v1837_v17, %v1823_v3  ;;  %v1843_v26 = vrot.slane %v1824_v20, 4  ;;  %v1828_v27 = vadd.f32 %v1827_v8, %v1826_v7 }
0x13e1   :  { %v1834_v28 = vadd.f32 %v1833_v24, %v1832_v14  ;;  %v1839_v29 = vrot.slane %v1838_v25, 2  ;;  %v1844_v30 = vadd.f32 %v1843_v26, %v1824_v20  ;;  %v1829_v34 = vrot.slane %v1828_v27, 1 }
0x13e3   :  { %v1835_v31 = vrot.slane %v1834_v28, 1  ;;  %v1840_v32 = vadd.f32 %v1839_v29, %v1838_v25  ;;  %v1845_v33 = vrot.slane %v1844_v30, 2  ;;  %v1830_v45 = vadd.f32 %v1829_v34, %v1828_v27 }
0x13e5   :  { %v1841_v35 = vrot.slane %v1840_v32, 1  ;;  %v1846_v38 = vadd.f32 %v1845_v33, %v1844_v30  ;;  %v1836_v42 = vadd.f32 %v1835_v31, %v1834_v28  ;;  %v1849_v37 = vmul.f32 %v1830_v45, %v1830_v45 }
0x13e7   :  { %v1842_v43 = vadd.f32 %v1841_v35, %v1840_v32  ;;  %v1847_v44 = vrot.slane %v1846_v38, 1  ;;  %v1850_v56 = vmul.f32 %v1836_v42, %v1836_v42 }
0x13e9   :  { %v1848_v47 = vadd.f32 %v1847_v44, %v1846_v38  ;;  %v1851_v50 = vmul.f32 %v1842_v43, %v1842_v43 }
0x13eb   :  { %v1852_v55 = vmul.f32 %v1848_v47, %v1848_v47  ;;  %v1857_v59 = vsel %vm268_vm2, %v1851_v50, %v1849_v37 }
0x13ed   :  { %v1858_v53 = vsel %vm268_vm2, %v1852_v55, %v1850_v56 }
0x13ee   :  { %1925 = vmatprep.mubr.f32.mxu1 %v1858_v53 }
0x13ef   :  { %1926 = vmatmul.mubr.f32.vlgmr.msra.gmra.mxu1 %v1857_v59 }
0x14af   :  { %v2411_v54 = vpop.f32.mrf.mxu1 }
0x14b1   :  { %v2412_v23 = vpop.f32.mrf.mxu1 }
0x14b2   :  { %v2413_v63 = vadd.f32 %v2412_v23, %v2411_v54 }
0x14b4   :  { %v1928_v9 = vadd.f32 1e-07, %v2413_v63 }
0x14b6   :  { %2468 = vrsqrt.f32 %v1928_v9 }
0x14c3   :  { %v2469_v46 = vpop.eup %2468 }
0x14c4   :  { %2086 = vmatmul.mubr.msk.f32.vlgmr.msra.gmra.mxu0 %vm140_vm0, %v2469_v46 }
0x1584   :  { %v2001_v21 = vpop.f32.mrf.mxu0 }
0x1585   :  { %v2008_v36 = vrot.slane %v2001_v21, 1  ;;  %v2014_v58 = vmul.f32 %v2001_v21, %v1830_v45 }
0x1586   :  { %v2003_v39 = vpop.f32.mrf.mxu0 }
0x1587   :  { %v2009_v40 = vrot.slane %v2003_v39, 1  ;;  %v2015_v41 = vmul.f32 %v2003_v39, %v1836_v42  ;;  %v2016_v2 = vmul.f32 %v2008_v36, %v1842_v43 }
0x1589   :  { %v2017_v16 = vmul.f32 %v2009_v40, %v1848_v47  ;;  %v2022_v18 = vcombine.low %v2014_v58, %v2015_v41 }
0x158b   :  { %v2030_v60 = vcombine.low %v2016_v2, %v2017_v16  ;;  %v2029_v48 = vrot.slane %v2022_v18, %v2028_v19 }
0x158d   :  { %v2037_v5 = vrot.slane %v2030_v60, %v2028_v19 }
0x158f   :  { %v2042_v49 = vrot.slane %v2037_v5, 7 }
0x1591   :  { %v2043_v51 = vsel %vm268_vm2, %v2042_v49, %v2029_v48 }
0x1592   :  { %v2045_v13 = vsel %vm2044_vm3, %v2042_v49, %v2043_v51 }
0x1593   :  { %v2047_v52 = vsel %vm2046_vm4, %v2042_v49, %v2045_v13 }
0x1594   :  { %v2049_v10 = vsel %vm2048_vm5, %v2042_v49, %v2047_v52 }
0x1595   :  { %2051 = vst [vmem:[#allocation2] sm:$0xf] %v2049_v10 }
0x1596   :  { %2518 = shalt.err (!%p2515_p4)
}
0x1597   :  { %2061 = dma.vmem_to_hbm [thread:$0]  %s2059_s11, 64, %s3447_s5, [#allocation3]  }
0x1598   :  { %2527 = dma.done.wait [#allocation3], 64  }
0x1599   :  { %2528 = vsyncadd [#allocation3], 4294967232 }
0x159a   :  { %2065 = vsyncpa [#allocation3], 1 }

</bundles_post_ra>
